<compile_context>
chip_gen: v7x
topology: tpu7x:2x2x1
jax: 0.10.0
libtpu: 0.0.40
codegen_flags: <defaults>
</compile_context>

<pallas_src>
import jax
import jax.numpy as jnp
import numpy as np
from jax.experimental import pallas as pl
from jax.experimental.pallas import tpu as pltpu

N_CAT = 6            # NOCS category count for the one-hot vector
C_XYZ = 3
C_IN = C_XYZ + N_CAT
C1, C2, C3, C4 = 64, 128, 256, 1024


def _pcl_encoder_kernel(x_ref, b1e_ref, w1_ref, w2_ref, b2_ref,
                        w3_ref, b3_ref, w4_ref, b4_ref,
                        local_ref, global_ref, gmax_ref):
    """Grid = (B, N // TN): one (batch, point-tile) per step.

    x_ref      : (1, TN, 3)    prior points (xyz only; one-hot folded into b1e)
    b1e_ref    : (1, 1, 64)    per-batch effective conv1 bias
    wK_ref     : (Cin, Cout)   1x1-conv weights (w3/w4 stored in bf16)
    bK_ref     : (1, Cout)     conv biases (f32)
    local_ref  : (1, 128, TN)  per-point conv2 feature, torch (B, C, N) layout
    global_ref : (1, 1, 1024)  max-pooled conv4 feature (stored on last tile)
    gmax_ref   : (1, 1024) f32 running-max accumulator (VMEM scratch)
    """
    n = pl.program_id(1)

    x = x_ref[0]                                                    # (TN, 3)

    h1 = jnp.dot(x, w1_ref[...], preferred_element_type=jnp.float32)
    h1 = jnp.maximum(h1 + b1e_ref[0], 0.0)                          # (TN, 64)

    h2 = jnp.dot(h1, w2_ref[...], preferred_element_type=jnp.float32)
    h2 = jnp.maximum(h2 + b2_ref[...], 0.0)                         # (TN, 128)

    # localFeat tile, transposed in-kernel (XLU) -> lane-dense (128, TN) store.
    local_ref[0] = h2.T

    # conv3 / conv4 in bf16 on the MXU with f32 accumulation (globalFeat path).
    h3 = jnp.dot(h2.astype(jnp.bfloat16), w3_ref[...],
                 preferred_element_type=jnp.float32)
    h3 = jnp.maximum(h3 + b3_ref[...], 0.0)                         # (TN, 256)

    h4 = jnp.dot(h3.astype(jnp.bfloat16), w4_ref[...],
                 preferred_element_type=jnp.float32)
    h4 = jnp.maximum(h4 + b4_ref[...], 0.0)                         # (TN, 1024)

    @pl.when(n == 0)
    def _():
        gmax_ref[...] = jnp.full((1, C4), -jnp.inf, jnp.float32)

    gmax_ref[...] = jnp.maximum(gmax_ref[...],
                                jnp.max(h4, axis=0, keepdims=True))

    @pl.when(n == pl.num_programs(1) - 1)
    def _():
        global_ref[0] = gmax_ref[...]


def _choose_point_tile(n):
    for cand in (512, 256, 128, 64):
        if n % cand == 0:
            return cand
    return n   # small / odd N: one full block


@jax.jit
def prior_extra_net(obj_id, prior, params):
    """Forward pass of PriorExtraNet.

    obj_id : (B,)       int32 category index
    prior  : (B, N, 3)  float32 prior point cloud
    returns (localFeat (B, 128, N) f32, globalFeat (B, 1024) f32)
    """
    B, N, _ = prior.shape
    w1, b1, w2, b2, w3, b3, w4, b4 = params

    # Fold the per-point one-hot channels into an effective per-batch conv1
    # bias:   concat([xyz, oh]) @ W1 == xyz @ W1[:3] + oh @ W1[3:].
    one_hot = jax.nn.one_hot(obj_id, N_CAT, dtype=jnp.float32)          # (B, 6)
    b1_eff = (b1 + one_hot @ w1[C_XYZ:]).reshape(B, 1, C1)              # (B,1,64)
    w1_xyz = w1[:C_XYZ]                                                 # (3, 64)

    TN = _choose_point_tile(N)
    NT = N // TN

    wconst = lambda b, n: (0, 0)     # untiled weights / biases (fetched once)

    local_feat, global_feat = pl.pallas_call(
        _pcl_encoder_kernel,
        out_shape=(
            jax.ShapeDtypeStruct((B, C2, N), jnp.float32),
            jax.ShapeDtypeStruct((B, 1, C4), jnp.float32),
        ),
        grid_spec=pltpu.PrefetchScalarGridSpec(
            num_scalar_prefetch=0,
            grid=(B, NT),
            in_specs=[
                pl.BlockSpec((1, TN, C_XYZ), lambda b, n: (b, n, 0)),
                pl.BlockSpec((1, 1, C1), lambda b, n: (b, 0, 0)),
                pl.BlockSpec((C_XYZ, C1), wconst),
                pl.BlockSpec((C1, C2), wconst),
                pl.BlockSpec((1, C2), wconst),
                pl.BlockSpec((C2, C3), wconst),
                pl.BlockSpec((1, C3), wconst),
                pl.BlockSpec((C3, C4), wconst),
                pl.BlockSpec((1, C4), wconst),
            ],
            out_specs=[
                pl.BlockSpec((1, C2, TN), lambda b, n: (b, 0, n)),
                pl.BlockSpec((1, 1, C4), lambda b, n: (b, 0, 0)),
            ],
            scratch_shapes=[pltpu.VMEM((1, C4), jnp.float32)],
        ),
        compiler_params=pltpu.CompilerParams(
            dimension_semantics=("parallel", "arbitrary")),
    )(prior, b1_eff, w1_xyz, w2, b2, w3, b3, w4, b4)

    return local_feat, global_feat.reshape(B, C4)


def init_params(key):
    """Deterministic synthetic weights (Kaiming-ish scale); w3/w4 in bf16."""
    keys = jax.random.split(key, 8)
    dims = [(C_IN, C1), (C1, C2), (C2, C3), (C3, C4)]
    params = []
    for i, (cin, cout) in enumerate(dims):
        w = jax.random.normal(keys[2 * i], (cin, cout), jnp.float32)
        w = w * (2.0 / cin) ** 0.5
        b = 0.01 * jax.random.normal(keys[2 * i + 1], (1, cout), jnp.float32)
        params += [w, b]
    w1, b1, w2, b2, w3, b3, w4, b4 = params
    return (w1, b1, w2, b2,
            w3.astype(jnp.bfloat16), b3,
            w4.astype(jnp.bfloat16), b4)


def _reference(obj_id, prior, params):
    """Pure-JAX reference with the same dtype choices as the kernel."""
    w1, b1, w2, b2, w3, b3, w4, b4 = params
    B, N, _ = prior.shape
    oh = jax.nn.one_hot(obj_id, N_CAT, dtype=jnp.float32)
    x = jnp.concatenate(
        [prior, jnp.broadcast_to(oh[:, None, :], (B, N, N_CAT))], axis=-1)
    h1 = jax.nn.relu(jnp.einsum('bni,io->bno', x, w1,
                                preferred_element_type=jnp.float32) + b1)
    h2 = jax.nn.relu(jnp.einsum('bni,io->bno', h1, w2,
                                preferred_element_type=jnp.float32) + b2)
    h3 = jax.nn.relu(jnp.einsum('bni,io->bno', h2.astype(jnp.bfloat16), w3,
                                preferred_element_type=jnp.float32) + b3)
    h4 = jax.nn.relu(jnp.einsum('bni,io->bno', h3.astype(jnp.bfloat16), w4,
                                preferred_element_type=jnp.float32) + b4)
    return jnp.transpose(h2, (0, 2, 1)), jnp.max(h4, axis=1)


if __name__ == "__main__":
    key = jax.random.PRNGKey(0)
    k_prior, k_id, k_param = jax.random.split(key, 3)

    B, N = 2, 128
    prior = jax.random.normal(k_prior, (B, N, 3), jnp.float32)
    obj_id = jax.random.randint(k_id, (B,), 0, N_CAT, jnp.int32)
    params = init_params(k_param)

    local_feat, global_feat = prior_extra_net(obj_id, prior, params)
    jax.block_until_ready((local_feat, global_feat))

    assert local_feat.shape == (B, C2, N)
    assert global_feat.shape == (B, C4)

    ref_local, ref_global = _reference(obj_id, prior, params)
    np.testing.assert_allclose(np.asarray(local_feat), np.asarray(ref_local),
                               rtol=5e-2, atol=5e-2)
    np.testing.assert_allclose(np.asarray(global_feat), np.asarray(ref_global),
                               rtol=5e-2, atol=5e-2)
    print("KERNEL_OK")
</pallas_src>

<mosaic_0001>
module attributes {stable_mosaic.version = 11 : i64} {
  func.func @_pcl_encoder_kernel(%arg0: i32, %arg1: i32, %arg2: memref<1x128x3xf32, #tpu.memory_space<vmem>>, %arg3: memref<1x1x64xf32, #tpu.memory_space<vmem>>, %arg4: memref<3x64xf32, #tpu.memory_space<vmem>>, %arg5: memref<64x128xf32, #tpu.memory_space<vmem>>, %arg6: memref<1x128xf32, #tpu.memory_space<vmem>>, %arg7: memref<128x256xbf16, #tpu.memory_space<vmem>>, %arg8: memref<1x256xf32, #tpu.memory_space<vmem>>, %arg9: memref<256x1024xbf16, #tpu.memory_space<vmem>>, %arg10: memref<1x1024xf32, #tpu.memory_space<vmem>>, %arg11: memref<1x128x128xf32, #tpu.memory_space<vmem>>, %arg12: memref<1x1x1024xf32, #tpu.memory_space<vmem>>, %arg13: memref<1x1024xf32, #tpu.memory_space<vmem>>) attributes {dimension_semantics = [#tpu.dimension_semantics<parallel>, #tpu.dimension_semantics<arbitrary>], iteration_bounds = array<i64: 2, 1>, scalar_prefetch = 0 : i64, scratch_operands = 1 : i64, tpu.core_type = #tpu.core_type<tc>, window_params = [{transform_indices = @transform_0, window_bounds = array<i64: 1, 128, 3>}, {transform_indices = @transform_1, window_bounds = array<i64: 1, 1, 64>}, {pipeline_mode = #tpu.pipeline_mode<synchronous>, transform_indices = @transform_2, window_bounds = array<i64: 3, 64>}, {pipeline_mode = #tpu.pipeline_mode<synchronous>, transform_indices = @transform_3, window_bounds = array<i64: 64, 128>}, {pipeline_mode = #tpu.pipeline_mode<synchronous>, transform_indices = @transform_4, window_bounds = array<i64: 1, 128>}, {pipeline_mode = #tpu.pipeline_mode<synchronous>, transform_indices = @transform_5, window_bounds = array<i64: 128, 256>}, {pipeline_mode = #tpu.pipeline_mode<synchronous>, transform_indices = @transform_6, window_bounds = array<i64: 1, 256>}, {pipeline_mode = #tpu.pipeline_mode<synchronous>, transform_indices = @transform_7, window_bounds = array<i64: 256, 1024>}, {pipeline_mode = #tpu.pipeline_mode<synchronous>, transform_indices = @transform_8, window_bounds = array<i64: 1, 1024>}, {transform_indices = @transform_9, window_bounds = array<i64: 1, 128, 128>}, {transform_indices = @transform_10, window_bounds = array<i64: 1, 1, 1024>}]} {
    %c0 = arith.constant 0 : index
    %c0_0 = arith.constant 0 : index
    %c0_1 = arith.constant 0 : index
    %0 = vector.load %arg2[%c0, %c0_0, %c0_1] : memref<1x128x3xf32, #tpu.memory_space<vmem>>, vector<1x128x3xf32>
    %1 = vector.shape_cast %0 : vector<1x128x3xf32> to vector<128x3xf32>
    %c0_2 = arith.constant 0 : index
    %c0_3 = arith.constant 0 : index
    %2 = vector.load %arg4[%c0_2, %c0_3] : memref<3x64xf32, #tpu.memory_space<vmem>>, vector<3x64xf32>
    %cst = arith.constant dense<0.000000e+00> : vector<128x64xf32>
    %3 = tpu.matmul %1, %2, %cst {dimension_numbers = #tpu.dot_dimension_numbers<[1], [0], [0], [1], [0, 0, 1, 1], [], []>} : vector<128x3xf32>, vector<3x64xf32>, vector<128x64xf32> -> vector<128x64xf32>
    %c0_4 = arith.constant 0 : index
    %c0_5 = arith.constant 0 : index
    %c0_6 = arith.constant 0 : index
    %4 = vector.load %arg3[%c0_4, %c0_5, %c0_6] : memref<1x1x64xf32, #tpu.memory_space<vmem>>, vector<1x1x64xf32>
    %5 = vector.shape_cast %4 : vector<1x1x64xf32> to vector<1x64xf32>
    %6 = vector.broadcast %5 : vector<1x64xf32> to vector<128x64xf32>
    %7 = arith.addf %3, %6 : vector<128x64xf32>
    %cst_7 = arith.constant 0.000000e+00 : f32
    %8 = vector.broadcast %cst_7 : f32 to vector<128x64xf32>
    %9 = arith.maximumf %7, %8 : vector<128x64xf32>
    %c0_8 = arith.constant 0 : index
    %c0_9 = arith.constant 0 : index
    %10 = vector.load %arg5[%c0_8, %c0_9] : memref<64x128xf32, #tpu.memory_space<vmem>>, vector<64x128xf32>
    %cst_10 = arith.constant dense<0.000000e+00> : vector<128x128xf32>
    %11 = tpu.matmul %9, %10, %cst_10 {dimension_numbers = #tpu.dot_dimension_numbers<[1], [0], [0], [1], [0, 0, 1, 1], [], []>} : vector<128x64xf32>, vector<64x128xf32>, vector<128x128xf32> -> vector<128x128xf32>
    %c0_11 = arith.constant 0 : index
    %c0_12 = arith.constant 0 : index
    %12 = vector.load %arg6[%c0_11, %c0_12] : memref<1x128xf32, #tpu.memory_space<vmem>>, vector<1x128xf32>
    %13 = vector.broadcast %12 : vector<1x128xf32> to vector<128x128xf32>
    %14 = arith.addf %11, %13 : vector<128x128xf32>
    %cst_13 = arith.constant 0.000000e+00 : f32
    %15 = vector.broadcast %cst_13 : f32 to vector<128x128xf32>
    %16 = arith.maximumf %14, %15 : vector<128x128xf32>
    %17 = tpu.transpose %16, [1, 0] : vector<128x128xf32> -> vector<128x128xf32>
    %c0_14 = arith.constant 0 : index
    %c0_15 = arith.constant 0 : index
    %c0_16 = arith.constant 0 : index
    %18 = vector.load %arg11[%c0_14, %c0_15, %c0_16] : memref<1x128x128xf32, #tpu.memory_space<vmem>>, vector<1x128x128xf32>
    %19 = vector.shape_cast %18 : vector<1x128x128xf32> to vector<128x128xf32>
    %20 = vector.shape_cast %17 : vector<128x128xf32> to vector<1x128x128xf32>
    tpu.vector_store %arg11[%c0_14, %c0_15, %c0_16], %20 {strides = array<i32>} : memref<1x128x128xf32, #tpu.memory_space<vmem>>, vector<1x128x128xf32>,
    %21 = arith.truncf %16 : vector<128x128xf32> to vector<128x128xbf16>
    %c0_17 = arith.constant 0 : index
    %c0_18 = arith.constant 0 : index
    %22 = vector.load %arg7[%c0_17, %c0_18] : memref<128x256xbf16, #tpu.memory_space<vmem>>, vector<128x256xbf16>
    %cst_19 = arith.constant dense<0.000000e+00> : vector<128x256xf32>
    %23 = tpu.matmul %21, %22, %cst_19 {dimension_numbers = #tpu.dot_dimension_numbers<[1], [0], [0], [1], [0, 0, 1, 1], [], []>} : vector<128x128xbf16>, vector<128x256xbf16>, vector<128x256xf32> -> vector<128x256xf32>
    %c0_20 = arith.constant 0 : index
    %c0_21 = arith.constant 0 : index
    %24 = vector.load %arg8[%c0_20, %c0_21] : memref<1x256xf32, #tpu.memory_space<vmem>>, vector<1x256xf32>
    %25 = vector.broadcast %24 : vector<1x256xf32> to vector<128x256xf32>
    %26 = arith.addf %23, %25 : vector<128x256xf32>
    %cst_22 = arith.constant 0.000000e+00 : f32
    %27 = vector.broadcast %cst_22 : f32 to vector<128x256xf32>
    %28 = arith.maximumf %26, %27 : vector<128x256xf32>
    %29 = arith.truncf %28 : vector<128x256xf32> to vector<128x256xbf16>
    %c0_23 = arith.constant 0 : index
    %c0_24 = arith.constant 0 : index
    %30 = vector.load %arg9[%c0_23, %c0_24] : memref<256x1024xbf16, #tpu.memory_space<vmem>>, vector<256x1024xbf16>
    %cst_25 = arith.constant dense<0.000000e+00> : vector<128x1024xf32>
    %31 = tpu.matmul %29, %30, %cst_25 {dimension_numbers = #tpu.dot_dimension_numbers<[1], [0], [0], [1], [0, 0, 1, 1], [], []>} : vector<128x256xbf16>, vector<256x1024xbf16>, vector<128x1024xf32> -> vector<128x1024xf32>
    %c0_26 = arith.constant 0 : index
    %c0_27 = arith.constant 0 : index
    %32 = vector.load %arg10[%c0_26, %c0_27] : memref<1x1024xf32, #tpu.memory_space<vmem>>, vector<1x1024xf32>
    %33 = vector.broadcast %32 : vector<1x1024xf32> to vector<128x1024xf32>
    %34 = arith.addf %31, %33 : vector<128x1024xf32>
    %cst_28 = arith.constant 0.000000e+00 : f32
    %35 = vector.broadcast %cst_28 : f32 to vector<128x1024xf32>
    %36 = arith.maximumf %34, %35 : vector<128x1024xf32>
    %c0_i32 = arith.constant 0 : i32
    %37 = arith.cmpi eq, %arg1, %c0_i32 : i32
    %38 = arith.extui %37 : i1 to i32
    %c0_i32_29 = arith.constant 0 : i32
    %39 = arith.cmpi ne, %38, %c0_i32_29 : i32
    scf.if %39 {
      %cst_37 = arith.constant 0xFF800000 : f32
      %48 = vector.broadcast %cst_37 : f32 to vector<1x1024xf32>
      %c0_38 = arith.constant 0 : index
      %c0_39 = arith.constant 0 : index
      %49 = vector.load %arg13[%c0_38, %c0_39] : memref<1x1024xf32, #tpu.memory_space<vmem>>, vector<1x1024xf32>
      tpu.vector_store %arg13[%c0_38, %c0_39], %48 {strides = array<i32>} : memref<1x1024xf32, #tpu.memory_space<vmem>>, vector<1x1024xf32>,
    } else {
    }
    %c0_30 = arith.constant 0 : index
    %c0_31 = arith.constant 0 : index
    %40 = vector.load %arg13[%c0_30, %c0_31] : memref<1x1024xf32, #tpu.memory_space<vmem>>, vector<1x1024xf32>
    %cst_32 = arith.constant dense<0xFF800000> : vector<1024xf32>
    %41 = vector.multi_reduction <maximumf>, %36, %cst_32 [0] : vector<128x1024xf32> to vector<1024xf32>
    %42 = vector.shape_cast %41 : vector<1024xf32> to vector<1x1024xf32>
    %43 = arith.maximumf %40, %42 : vector<1x1024xf32>
    %c0_33 = arith.constant 0 : index
    %c0_34 = arith.constant 0 : index
    %44 = vector.load %arg13[%c0_33, %c0_34] : memref<1x1024xf32, #tpu.memory_space<vmem>>, vector<1x1024xf32>
    tpu.vector_store %arg13[%c0_33, %c0_34], %43 {strides = array<i32>} : memref<1x1024xf32, #tpu.memory_space<vmem>>, vector<1x1024xf32>,
    %c0_i32_35 = arith.constant 0 : i32
    %45 = arith.cmpi eq, %arg1, %c0_i32_35 : i32
    %46 = arith.extui %45 : i1 to i32
    %c0_i32_36 = arith.constant 0 : i32
    %47 = arith.cmpi ne, %46, %c0_i32_36 : i32
    scf.if %47 {
      %c0_37 = arith.constant 0 : index
      %c0_38 = arith.constant 0 : index
      %48 = vector.load %arg13[%c0_37, %c0_38] : memref<1x1024xf32, #tpu.memory_space<vmem>>, vector<1x1024xf32>
      %c0_39 = arith.constant 0 : index
      %c0_40 = arith.constant 0 : index
      %c0_41 = arith.constant 0 : index
      %49 = vector.load %arg12[%c0_39, %c0_40, %c0_41] : memref<1x1x1024xf32, #tpu.memory_space<vmem>>, vector<1x1x1024xf32>
      %50 = vector.shape_cast %49 : vector<1x1x1024xf32> to vector<1x1024xf32>
      %51 = vector.shape_cast %48 : vector<1x1024xf32> to vector<1x1x1024xf32>
      tpu.vector_store %arg12[%c0_39, %c0_40, %c0_41], %51 {strides = array<i32>} : memref<1x1x1024xf32, #tpu.memory_space<vmem>>, vector<1x1x1024xf32>,
    } else {
    }
    return
  }
  func.func @transform_0(%arg0: i32, %arg1: i32) -> (i32, i32, i32) {
    %c0_i32 = arith.constant 0 : i32
    %c0_i32_0 = arith.constant 0 : i32
    return %arg0, %arg1, %c0_i32 : i32, i32, i32
  }
  func.func @transform_1(%arg0: i32, %arg1: i32) -> (i32, i32, i32) {
    %c0_i32 = arith.constant 0 : i32
    %c0_i32_0 = arith.constant 0 : i32
    %c0_i32_1 = arith.constant 0 : i32
    return %arg0, %c0_i32, %c0_i32_0 : i32, i32, i32
  }
  func.func @transform_2(%arg0: i32, %arg1: i32) -> (i32, i32) {
    %c0_i32 = arith.constant 0 : i32
    %c0_i32_0 = arith.constant 0 : i32
    %c0_i32_1 = arith.constant 0 : i32
    return %c0_i32, %c0_i32_0 : i32, i32
  }
  func.func @transform_3(%arg0: i32, %arg1: i32) -> (i32, i32) {
    %c0_i32 = arith.constant 0 : i32
    %c0_i32_0 = arith.constant 0 : i32
    %c0_i32_1 = arith.constant 0 : i32
    return %c0_i32, %c0_i32_0 : i32, i32
  }
  func.func @transform_4(%arg0: i32, %arg1: i32) -> (i32, i32) {
    %c0_i32 = arith.constant 0 : i32
    %c0_i32_0 = arith.constant 0 : i32
    %c0_i32_1 = arith.constant 0 : i32
    return %c0_i32, %c0_i32_0 : i32, i32
  }
  func.func @transform_5(%arg0: i32, %arg1: i32) -> (i32, i32) {
    %c0_i32 = arith.constant 0 : i32
    %c0_i32_0 = arith.constant 0 : i32
    %c0_i32_1 = arith.constant 0 : i32
    return %c0_i32, %c0_i32_0 : i32, i32
  }
  func.func @transform_6(%arg0: i32, %arg1: i32) -> (i32, i32) {
    %c0_i32 = arith.constant 0 : i32
    %c0_i32_0 = arith.constant 0 : i32
    %c0_i32_1 = arith.constant 0 : i32
    return %c0_i32, %c0_i32_0 : i32, i32
  }
  func.func @transform_7(%arg0: i32, %arg1: i32) -> (i32, i32) {
    %c0_i32 = arith.constant 0 : i32
    %c0_i32_0 = arith.constant 0 : i32
    %c0_i32_1 = arith.constant 0 : i32
    return %c0_i32, %c0_i32_0 : i32, i32
  }
  func.func @transform_8(%arg0: i32, %arg1: i32) -> (i32, i32) {
    %c0_i32 = arith.constant 0 : i32
    %c0_i32_0 = arith.constant 0 : i32
    %c0_i32_1 = arith.constant 0 : i32
    return %c0_i32, %c0_i32_0 : i32, i32
  }
  func.func @transform_9(%arg0: i32, %arg1: i32) -> (i32, i32, i32) {
    %c0_i32 = arith.constant 0 : i32
    %c0_i32_0 = arith.constant 0 : i32
    return %arg0, %c0_i32, %arg1 : i32, i32, i32
  }
  func.func @transform_10(%arg0: i32, %arg1: i32) -> (i32, i32, i32) {
    %c0_i32 = arith.constant 0 : i32
    %c0_i32_0 = arith.constant 0 : i32
    %c0_i32_1 = arith.constant 0 : i32
    return %arg0, %c0_i32, %c0_i32_0 : i32, i32, i32
  }
}

</mosaic_0001>

<bundles_post_ra>
// kernel: prior_extra_net.1
= control target key start
LH: loop header
LB: loop body
LE: loop exit
PB: predicated region body
PF: predicated region fallthrough
CT: control target
= control target key end

     0   :  { %16 = vsyncpa [#allocation4], 0  ;;  %s4477_s0 = inlined_call_operand.vmem [shape: f32[2,128,3], index: 0, kind: input, shape index: {}]   ;;  %s4478_s1 = inlined_call_operand.vmem [shape: f32[2,1,64], index: 1, kind: input, shape index: {}]   ;;  %s4479_s2 = inlined_call_operand.vmem [shape: f32[3,64], index: 2, kind: input, shape index: {}]   ;;  %s4480_s3 = inlined_call_operand.vmem [shape: f32[64,128], index: 3, kind: input, shape index: {}]   ;;  %s4481_s4 = inlined_call_operand.vmem [shape: f32[1,128], index: 4, kind: input, shape index: {}]   ;;  %s4482_s5 = inlined_call_operand.vmem [shape: bf16[128,256], index: 5, kind: input, shape index: {}]   ;;  %s4483_s6 = inlined_call_operand.vmem [shape: f32[1,256], index: 6, kind: input, shape index: {}]   ;;  %s4484_s7 = inlined_call_operand.hbm [shape: bf16[256,1024], index: 7, kind: input, shape index: {}]   ;;  %s4485_s8 = inlined_call_operand.vmem [shape: f32[1,1024], index: 8, kind: input, shape index: {}]   ;;  %s4486_s9 = inlined_call_operand.hbm [shape: f32[2,128,128], index: 9, kind: output, shape index: {0}]   ;;  %s4487_s10 = inlined_call_operand.vmem [shape: f32[2,1,1024], index: 10, kind: output, shape index: {1}]  }
   0x1   :  { %17 = vsyncpa [#allocation5], 0 }
   0x2   :  { %19 = vsyncpa [#allocation5 + $0x1], 0  ;;  %s3614_s13 = smov 0   ;;  %s3616_s14 = smov 0  }
   0x3   :  { %s3618_s15 = smov 0   ;;  %s3620_s16 = smov 0  }
   0x4   :  { %s3622_s17 = smov 0   ;;  %s3624_s18 = smov 0  }
   0x5 LB: > { %4503 = sst [smem:[#allocation9_spill]] %s3545_s17  ;;  %s2991_s19 = sadd.s32 4294967295, %s3549_s18   ;;  %s3549_s18 = sphi %s3624_s18, %s25_s18   ;;  %s3545_s17 = sphi %s3622_s17, %s4527_s17   ;;  %s3541_s16 = sphi %s3620_s16, %s4526_s16   ;;  %s3537_s15 = sphi %s3618_s15, %s4530_s15   ;;  %s3533_s14 = sphi %s3616_s14, %s4529_s14   ;;  %s3529_s13 = sphi %s3614_s13, %s4528_s13  }
   0x6   : > { %s2992_s20 = sadd.s32 4294967294, %s3549_s18   ;;  %s37_s21 = sadd.s32 1, %s3545_s17 }
   0x7   : > { %s247_s22 = sadd.s32 1, %s3537_s15  ;;  %p39_p0 = scmp.ge.s32.totalorder %s37_s21, 2 }
   0x8   : > { %p257_p1 = scmp.ne.s32.totalorder %s3537_s15, %s3533_s14  ;;  %p258_p2 = scmp.eq.s32.totalorder %s2991_s19, 1 }
   0x9   : > { %p263_p3 = scmp.ne.s32.totalorder %s3533_s14, %s3529_s13  ;;  %s4532_s21 = smov (%p39_p0, %s37_s21), 0 }
   0xa   : > { %4504 = sst [smem:[#allocation10_spill]] %s4532_s21  ;;  %p3654_p4 = por %p258_p2, %p257_p1 }
   0xb   : > { %p264_p5 = scmp.eq.s32.totalorder %s2992_s20, 1  ;;  %s242_s24 = ssub.s32 %s3545_s17, %s4532_s21 }
   0xc   : > { %s4505_s23 = scalar_select %p3654_p4, 1, 0 }
   0xd   : > { %p2993_p6 = scmp.ge.s32.totalorder %s3549_s18, 1  ;;  %p245_p7 = scmp.eq.s32.totalorder %s242_s24, 0 }
   0xe   : > { %p3661_p8 = por %p264_p5, %p263_p3  ;;  %p297_p9 = scmp.lt.s32.totalorder %s3549_s18, 3 }
   0xf   : > { %s3667_s26 = scalar_select %p245_p7, %s3537_s15, %s247_s22  }
  0x10   : > { %s4506_s25 = scalar_select %p3661_p8, 1, 0 }
  0x11   : > { %p3669_p10 = pnand %p2993_p6, %p297_p9  ;;  %p3673_p11 = scmp.eq.s32.totalorder %s2991_s19, 0 }
  0x12   : > { %s3551_s29 = smov [#allocation3]   ;;  %s3439_s22 = scalar_lea.hbm %s4484_s7, 16384 }
  0x13   : > { %s4507_s27 = scalar_select %p3669_p10, 1, 0 }
  0x14   : > { %s4508_s28 = scalar_select %p3673_p11, 1, 0 }
  0x15   : > { %p3349_p12 = pneg %p3669_p10  ;;  %s324_s30 = sshll.u32 %s3551_s29, 4  ;;  %s325_s30 = int_to_ptr.vmem [resolvable:$true] %s324_s30 }
  0x16   : > { %p3440_p0 = scmp.ne.s32.totalorder %s4484_s7, %s3439_s22  ;;  %p3446_p5 = scmp.lt.u32.totalorder %s3439_s22, %s4484_s7 }
  0x17   : > { %p3681_p13 = pnand %p3673_p11, %p3349_p12 }
  0x19   : > { %p3441_p1 = pneg %p3681_p13 }
  0x1b   : > { %p3442_p2 = pnand %p3441_p1, %p3440_p0 }
  0x1d   : > { %p3443_p3 = pneg %p3442_p2 }
  0x1f   : > { %p3448_p6 = pnand %p3446_p5, %p3443_p3 }
  0x21   : > { %3451 = shalt.err (!%p3448_p6)
}
  0x22   : > { %s3452_s17 = scalar_lea.vmem %s325_s30, 16384  ;;  %p3460_p8 = scmp.lt.s32.totalorder %s325_s30, %s325_s30 }
  0x23   : > { %p3453_p7 = scmp.ne.s32.totalorder %s325_s30, %s3452_s17  ;;  %p3461_p4 = scmp.lt.s32.totalorder %s3452_s17, %s3452_s17 }
  0x25   : > { %p3455_p9 = pnand %p3453_p7, %p3441_p1  ;;  %p3462_p11 = por %p3461_p4, %p3460_p8 }
  0x27   : > { %p3456_p12 = pneg %p3455_p9 }
  0x29   : > { %p3463_p10 = pnand %p3462_p11, %p3456_p12 }
  0x2b   : > { %3466 = shalt.err (!%p3463_p10)
}
  0x2c   : > { %s3552_s12 = smov 512   ;;  %s3553_s20 = smov 32  }
  0x2d   : > { %3352 = dma.hbm_to_vmem [thread:$0]  (!%p3681_p13), %s4484_s7, 16384, %s325_s30, [#allocation4], %s3552_s12, %s3552_s12, %s3553_s20  }
  0x2e   : > { %p4510_p0 = scmp.ne.s32.totalorder %s4507_s27, 0 }
  0x30   : > { %362 = sbr.rel (%p4510_p0) target bundleno = 1097 (0x449), region = 56 }
  0x37   : > { %p4511_p2 = scmp.ne.s32.totalorder %s4508_s28, 0 }
  0x39   : > { %3520 = dma.done.wait (%p4511_p2), [#allocation4], 16384  }
  0x3a   : > { %3522 = vsyncadd (%p4511_p2), [#allocation4], 4294950912  ;;  %p412_p4 = scmp.lt.s32.totalorder %s3541_s16, 1  ;;  %vm502_vm0 = vcmask 1042432   ;;  %vm453_vm1 = vcmask 23552   ;;  %v667_v6 = vld [vmem:[%s4480_s3] sm:$0xff] }
  0x3b   : > { %v445_v0 = vld [vmem:[%s4479_s2] sm:$0x7]  ;;  %v668_v8 = vld [vmem:[%s4480_s3 + $0x8] sm:$0xff]  ;;  %v669_v9 = vld [vmem:[%s4480_s3 + $0x10] sm:$0xff]  ;;  %vm682_vm2 = vcmask 523264   ;;  %s402_s12 = sand.u32 1, %s3533_s14  }
  0x3c   : > { %s3709_s17 = scalar_select %p412_p4, %s3541_s16, 1  ;;  %3229 = vmatprep.subr.msk.mxu0 %vm502_vm0, %v445_v0  ;;  %v670_v10 = vld [vmem:[%s4480_s3 + $0x18] sm:$0xff]  ;;  %v3295_v12 = vpack.c.bf16 %v668_v8, %v667_v6  ;;  %v671_v14 = vld [vmem:[%s4480_s3 + $0x20] sm:$0xff]  ;;  %v672_v15 = vld [vmem:[%s4480_s3 + $0x28] sm:$0xff] }
  0x3d   : > { %3230 = vmatpush3.msk.msra.mxu0 %vm502_vm0, %v445_v0  ;;  %v3299_v13 = vpack.c.bf16 %v670_v10, %v669_v9  ;;  %v3303_v17 = vpack.c.bf16 %v672_v15, %v671_v14  ;;  %v673_v26 = vld [vmem:[%s4480_s3 + $0x30] sm:$0xff]  ;;  %v674_v27 = vld [vmem:[%s4480_s3 + $0x38] sm:$0xff]  ;;  %v3415_v29 = vld [vmem:[%s4482_s5] ss:$8 sps:$4 sm:$0xff]   ;;  %s2998_s20 = sshll.u32 %s402_s12, 7  ;;  %s3187_s11 = sshll.u32 %s3541_s16, 11 }
  0x3e   : > { %s3186_s21 = sshll.u32 %s3709_s17, 7  ;;  %3296 = vmatprep.subr.bf16.mxu1 %v3295_v12  ;;  %v3307_v28 = vpack.c.bf16 %v674_v27, %v673_v26  ;;  %v3417_v30 = vld [vmem:[%s4482_s5 + $0x4] ss:$8 sps:$4 sm:$0xff]   ;;  %v3420_v31 = vld [vmem:[%s4482_s5 + $0x14] ss:$8 sps:$4 sm:$0xff]   ;;  %s423_s19 = scalar_lea.vmem %s4478_s1, %s3709_s17 }
  0x3f   : > { %s3715_s30 = scalar_lea.vmem %s4477_s0, %s3186_s21  ;;  %3298 = vmatpush3.bf16.msra.mxu1 %v3295_v12  ;;  %1056 = vmatprep.subr.bf16.mxu0 %v3417_v30  ;;  %v3418_v32 = vld [vmem:[%s4482_s5 + $0x10] ss:$8 sps:$4 sm:$0xff]   ;;  %v3423_v33 = vld [vmem:[%s4482_s5 + $0x24] ss:$8 sps:$4 sm:$0xff]   ;;  %v3421_v34 = vld [vmem:[%s4482_s5 + $0x20] ss:$8 sps:$4 sm:$0xff]   ;;  %s4326_s16 = scalar_lea.hbm %s4486_s9, %s3187_s11 }
  0x40   : > { %v429_v1 = vld [vmem:[%s3715_s30] sm:$0xff]  ;;  %v430_v2 = vld [vmem:[%s3715_s30 + $0x8] sm:$0xff]  ;;  %v431_v3 = vld [vmem:[%s3715_s30 + $0x10] sm:$0xff]  ;;  %3300 = vmatprep.subr.bf16.mxu1 %v3299_v13  ;;  %v3554_v30 = vmov 0   ;;  %p4524_p10 = scmp.ne.s32.totalorder %s4505_s23, 0 }
  0x41   : > { %3231 = vmatprep.mubr.msk.f32.mxu0 %vm453_vm1, %v429_v1  ;;  %v432_v4 = vld [vmem:[%s3715_s30 + $0x18] sm:$0xff]  ;;  %v433_v5 = vld [vmem:[%s3715_s30 + $0x20] sm:$0xff]  ;;  %v434_v7 = vld [vmem:[%s3715_s30 + $0x28] sm:$0xff] }
  0x42   : > { %3232 = vmatmul.mubr.msk.f32.vlgmr.msra.gmra.mrb[0].mxu0 %vm453_vm1, %v430_v2  ;;  %v435_v11 = vld [vmem:[%s3715_s30 + $0x30] sm:$0xff]  ;;  %v436_v16 = vld [vmem:[%s3715_s30 + $0x38] sm:$0xff]  ;;  %v437_v18 = vld [vmem:[%s3715_s30 + $0x40] sm:$0xff] }
  0x43   : > { %3234 = vmatprep.mubr.msk.f32.mxu0 %vm453_vm1, %v431_v3  ;;  %3302 = vmatpush3.bf16.msra.mxu1 %v3299_v13  ;;  %v438_v19 = vld [vmem:[%s3715_s30 + $0x48] sm:$0xff]  ;;  %v439_v20 = vld [vmem:[%s3715_s30 + $0x50] sm:$0xff]  ;;  %v440_v21 = vld [vmem:[%s3715_s30 + $0x58] sm:$0xff] }
  0x44   : > { %3304 = vmatprep.subr.bf16.mxu1 %v3303_v17  ;;  %v441_v22 = vld [vmem:[%s3715_s30 + $0x60] sm:$0xff]  ;;  %v442_v23 = vld [vmem:[%s3715_s30 + $0x68] sm:$0xff]  ;;  %v443_v24 = vld [vmem:[%s3715_s30 + $0x70] sm:$0xff]  ;;  %1057 = vmatpush1.bf16.msra.mxu0 %v3415_v29 }
  0x45   : > { %v444_v25 = vld [vmem:[%s3715_s30 + $0x78] sm:$0xff]  ;;  %1058 = vmatprep.subr.bf16.mxu0 %v3420_v31  ;;  %v3429_v37 = vld [vmem:[%s4482_s5 + $0x44] ss:$8 sps:$4 sm:$0xff]   ;;  %v3427_v38 = vld [vmem:[%s4482_s5 + $0x40] ss:$8 sps:$4 sm:$0xff]   ;;  %s4348_s30 = scalar_lea.sflag [#allocation5], %s402_s12 }
  0x46   : > { %3235 = vmatmul.mubr.msk.f32.gmra.mrb[2].mxu0 %vm453_vm1, %v432_v4  ;;  %v3426_v35 = vld [vmem:[%s4482_s5 + $0x34] ss:$8 sps:$4 sm:$0xff]   ;;  %v3424_v36 = vld [vmem:[%s4482_s5 + $0x30] ss:$8 sps:$4 sm:$0xff]   ;;  %v3435_v41 = vld [vmem:[%s4482_s5 + $0x64] ss:$8 sps:$4 sm:$0xff]  }
  0x47   : > { %3237 = vmatprep.mubr.msk.f32.mxu0 %vm453_vm1, %v433_v5  ;;  %3306 = vmatpush3.bf16.msra.mxu1 %v3303_v17  ;;  %v3432_v39 = vld [vmem:[%s4482_s5 + $0x54] ss:$8 sps:$4 sm:$0xff]   ;;  %v3430_v40 = vld [vmem:[%s4482_s5 + $0x50] ss:$8 sps:$4 sm:$0xff]   ;;  %v3433_v42 = vld [vmem:[%s4482_s5 + $0x60] ss:$8 sps:$4 sm:$0xff]  }
  0x48   : > { %3308 = vmatprep.subr.bf16.mxu1 %v3307_v28  ;;  %1059 = vmatpush1.bf16.msra.mxu0 %v3418_v32  ;;  %v3002_v43 = vld [vmem:[%s423_s19] ss:$0 sm:$0xff]  ;;  %v3436_v29 = vld [vmem:[%s4482_s5 + $0x70] ss:$8 sps:$4 sm:$0xff]   ;;  %s4201_s19 = scalar_lea.vmem [#allocation6], %s2998_s20  ;;  %s3556_s20 = smov [#allocation6]  }
  0x49   : > { %1060 = vmatprep.subr.bf16.mxu0 %v3423_v33  ;;  %v1217_v31 = vld [vmem:[#allocation3] sm:$0xff]  ;;  %v3845_v33 = vld [vmem:[#allocation3 + $0x8] sm:$0xff]  ;;  %s2865_s22 = sshll.u32 %s4201_s19, 4  ;;  %s4328_s22 = int_to_ptr.vmem [resolvable:$true] %s2865_s22 }
  0x4a   : > { %3238 = vmatmul.mubr.msk.f32.gmra.mrb[4].mxu0 %vm453_vm1, %v434_v7  ;;  %v1221_v32 = vld [vmem:[#allocation3 + $0x20] sm:$0xff]  ;;  %s3467_s29 = scalar_lea.vmem %s4328_s22, 2048 }
  0x4b   : > { %3240 = vmatprep.mubr.msk.f32.mxu0 %vm453_vm1, %v435_v11  ;;  %3310 = vmatpush3.bf16.msra.mxu1 %v3307_v28  ;;  %v3438_v28 = vld [vmem:[%s4482_s5 + $0x74] ss:$8 sps:$4 sm:$0xff]   ;;  %p3468_p8 = scmp.ne.s32.totalorder %s4328_s22, %s3467_s29 }
  0x4c   : > { %1061 = vmatpush1.bf16.msra.mxu0 %v3421_v34  ;;  %v3053_v34 = vcombine.low %v1217_v31, %v1221_v32 }
  0x4d   : > { %1062 = vmatprep.subr.bf16.mxu0 %v3426_v35  ;;  %v3054_v35 = vcombine.high %v1217_v31, %v1221_v32  ;;  %p3469_p11 = pnand %p3468_p8, %p4524_p10 }
  0x4e   : > { %3241 = vmatmul.mubr.msk.f32.gmra.mrb[6].mxu0 %vm453_vm1, %v436_v16 }
  0x4f   : > { %3243 = vmatprep.mubr.msk.f32.mxu0 %vm453_vm1, %v437_v18  ;;  %2027 = vmatprep.subr.bf16.mxu1 %v3054_v35  ;;  %v1226_v35 = vld [vmem:[#allocation3 + $0x48] sm:$0xff]  ;;  %p3470_p13 = pneg %p3469_p11 }
  0x50   : > { %1063 = vmatpush1.bf16.msra.mxu0 %v3424_v36  ;;  %v3847_v36 = vld [vmem:[#allocation3 + $0x28] sm:$0xff] }
  0x51   : > { %1064 = vmatprep.subr.bf16.mxu0 %v3429_v37  ;;  %v1225_v37 = vld [vmem:[#allocation3 + $0x40] sm:$0xff] }
  0x52   : > { %3244 = vmatmul.mubr.msk.f32.gmra.mrb[8].mxu0 %vm453_vm1, %v438_v19 }
  0x53   : > { %3246 = vmatprep.mubr.msk.f32.mxu0 %vm453_vm1, %v439_v20 }
  0x54   : > { %1065 = vmatpush1.bf16.msra.mxu0 %v3427_v38  ;;  %v1229_v38 = vld [vmem:[#allocation3 + $0x60] sm:$0xff] }
  0x55   : > { %1066 = vmatprep.subr.bf16.mxu0 %v3432_v39  ;;  %v3055_v39 = vcombine.low %v3845_v33, %v3847_v36 }
  0x56   : > { %3247 = vmatmul.mubr.msk.f32.gmra.mrb[10].mxu0 %vm453_vm1, %v440_v21 }
  0x57   : > { %3249 = vmatprep.mubr.msk.f32.mxu0 %vm453_vm1, %v441_v22 }
  0x58   : > { %1067 = vmatpush1.bf16.msra.mxu0 %v3430_v40  ;;  %v3056_v40 = vcombine.high %v3845_v33, %v3847_v36 }
  0x59   : > { %1068 = vmatprep.subr.bf16.mxu0 %v3435_v41  ;;  %v3062_v41 = vcombine.high %v1225_v37, %v1229_v38 }
  0x5a   : > { %3250 = vmatmul.mubr.msk.f32.gmra.mrb[12].mxu0 %vm453_vm1, %v442_v23 }
  0x5b   : > { %3252 = vmatprep.mubr.msk.f32.mxu0 %vm453_vm1, %v443_v24 }
  0x5c   : > { %1069 = vmatpush1.bf16.msra.mxu0 %v3433_v42  ;;  %v1233_v42 = vld [vmem:[#allocation3 + $0x80] sm:$0xff] }
  0x5d   : > { %1070 = vmatprep.subr.bf16.mxu0 %v3438_v28 }
  0x5e   : > { %3253 = vmatmul.mubr.msk.f32.gmra.mrb[14].mxu0 %vm453_vm1, %v444_v25 }
  0x5f   : > { %1088 = vmatprep.mubr.bf16.mxu0 %v3554_v30 }
  0x60   : > { %1071 = vmatpush1.bf16.msra.mxu0 %v3436_v29 }
  0x61   : > { %2140 = vmatprep.subr.bf16.mxu0 %v3056_v40 }
 0x115   : > { %v3233_v44 = vpop.f32.mrb[0].mxu0 }
 0x116   : > { %v578_v45 = vadd.f32 %v3233_v44, %v3002_v43  ;;  %v572_v46 = vpop.f32.mrb[1].mxu0  ;;  %v3061_v44 = vcombine.low %v1225_v37, %v1229_v38  ;;  %v1230_v37 = vld [vmem:[#allocation3 + $0x68] sm:$0xff] }
 0x117   : > { %v573_v47 = vadd.f32 %v3002_v43, %v572_v46  ;;  %v1241_v46 = vld [vmem:[#allocation3 + $0xc0] sm:$0xff] }
 0x118   : > { %v652_v50 = vmax.f32 %v578_v45, 0.0 }
 0x119   : > { %v651_v48 = vmax.f32 %v573_v47, 0.0  ;;  %v3236_v49 = vpop.f32.mrb[2].mxu0  ;;  %v1245_v47 = vld [vmem:[#allocation3 + $0xe0] sm:$0xff] }
 0x11a   : > { %v588_v51 = vadd.f32 %v3236_v49, %v3002_v43  ;;  %v582_v52 = vpop.f32.mrb[3].mxu0  ;;  %v3078_v49 = vcombine.high %v1241_v46, %v1245_v47 }
 0x11b   : > { %v583_v53 = vadd.f32 %v3002_v43, %v582_v52  ;;  %3271 = vmatprep.mubr.msk.f32.mxu1 %vm682_vm2, %v651_v48  ;;  %v3077_v52 = vcombine.low %v1241_v46, %v1245_v47  ;;  %v1234_v47 = vld [vmem:[#allocation3 + $0x88] sm:$0xff] }
 0x11c   : > { %v654_v54 = vmax.f32 %v588_v51, 0.0  ;;  %3272 = vmatmul.mubr.msk.f32.vlgmr.msra.gmra.mrb[0].mxu1 %vm682_vm2, %v652_v50  ;;  %v1249_v50 = vld [vmem:[#allocation3 + $0x100] sm:$0xff] }
 0x11d   : > { %v653_v55 = vmax.f32 %v583_v53, 0.0  ;;  %v3239_v56 = vpop.f32.mrb[4].mxu0  ;;  %2028 = vmatpush1.bf16.msra.mxu1 %v3053_v34  ;;  %v1253_v51 = vld [vmem:[#allocation3 + $0x120] sm:$0xff] }
 0x11e   : > { %v598_v57 = vadd.f32 %v3239_v56, %v3002_v43  ;;  %v592_v58 = vpop.f32.mrb[5].mxu0  ;;  %2029 = vmatprep.subr.bf16.mxu1 %v3062_v41  ;;  %v3086_v53 = vcombine.high %v1249_v50, %v1253_v51  ;;  %v3085_v56 = vcombine.low %v1249_v50, %v1253_v51 }
 0x11f   : > { %3274 = vmatprep.mubr.msk.f32.mxu1 %vm682_vm2, %v653_v55  ;;  %v593_v59 = vadd.f32 %v3002_v43, %v592_v58  ;;  %v1261_v55 = vld [vmem:[#allocation3 + $0x160] sm:$0xff] }
 0x120   : > { %3275 = vmatmul.mubr.msk.f32.gmra.mrb[2].mxu1 %vm682_vm2, %v654_v54  ;;  %v656_v60 = vmax.f32 %v598_v57, 0.0  ;;  %v1257_v54 = vld [vmem:[#allocation3 + $0x140] sm:$0xff] }
 0x121   : > { %v655_v61 = vmax.f32 %v593_v59, 0.0  ;;  %v3242_v62 = vpop.f32.mrb[6].mxu0  ;;  %2030 = vmatpush1.bf16.msra.mxu1 %v3061_v44  ;;  %v3094_v57 = vcombine.high %v1257_v54, %v1261_v55  ;;  %v1265_v58 = vld [vmem:[#allocation3 + $0x180] sm:$0xff] }
 0x122   : > { %v608_v63 = vadd.f32 %v3242_v62, %v3002_v43  ;;  %v602_v0 = vpop.f32.mrb[7].mxu0  ;;  %v1269_v59 = vld [vmem:[#allocation3 + $0x1a0] sm:$0xff] }
 0x123   : > { %3277 = vmatprep.mubr.msk.f32.mxu1 %vm682_vm2, %v655_v61  ;;  %v603_v1 = vadd.f32 %v3002_v43, %v602_v0  ;;  %v3102_v61 = vcombine.high %v1265_v58, %v1269_v59  ;;  %v1273_v62 = vld [vmem:[#allocation3 + $0x1c0] sm:$0xff]  ;;  %v3101_v0 = vcombine.low %v1265_v58, %v1269_v59  ;;  %v1242_v58 = vld [vmem:[#allocation3 + $0xc8] sm:$0xff] }
 0x124   : > { %3278 = vmatmul.mubr.msk.f32.gmra.mrb[4].mxu1 %vm682_vm2, %v656_v60  ;;  %v658_v2 = vmax.f32 %v608_v63, 0.0  ;;  %v3093_v60 = vcombine.low %v1257_v54, %v1261_v55  ;;  %v1277_v63 = vld [vmem:[#allocation3 + $0x1e0] sm:$0xff]  ;;  %v1246_v59 = vld [vmem:[#allocation3 + $0xe8] sm:$0xff] }
 0x125   : > { %v657_v3 = vmax.f32 %v603_v1, 0.0  ;;  %v3245_v4 = vpop.f32.mrb[8].mxu0  ;;  %v3110_v1 = vcombine.high %v1273_v62, %v1277_v63 }
 0x126   : > { %v618_v5 = vadd.f32 %v3245_v4, %v3002_v43  ;;  %v612_v6 = vpop.f32.mrb[9].mxu0  ;;  %v3109_v4 = vcombine.low %v1273_v62, %v1277_v63 }
 0x127   : > { %3280 = vmatprep.mubr.msk.f32.mxu1 %vm682_vm2, %v657_v3  ;;  %v613_v7 = vadd.f32 %v3002_v43, %v612_v6  ;;  %v1285_v3 = vld [vmem:[#allocation3 + $0x220] sm:$0xff] }
 0x128   : > { %3281 = vmatmul.mubr.msk.f32.gmra.mrb[6].mxu1 %vm682_vm2, %v658_v2  ;;  %v660_v8 = vmax.f32 %v618_v5, 0.0  ;;  %v1281_v2 = vld [vmem:[#allocation3 + $0x200] sm:$0xff] }
 0x129   : > { %v659_v9 = vmax.f32 %v613_v7, 0.0  ;;  %v3248_v10 = vpop.f32.mrb[10].mxu0  ;;  %v3118_v5 = vcombine.high %v1281_v2, %v1285_v3  ;;  %v1289_v6 = vld [vmem:[#allocation3 + $0x240] sm:$0xff] }
 0x12a   : > { %v628_v11 = vadd.f32 %v3248_v10, %v3002_v43  ;;  %v622_v12 = vpop.f32.mrb[11].mxu0  ;;  %v1293_v7 = vld [vmem:[#allocation3 + $0x260] sm:$0xff] }
 0x12b   : > { %3283 = vmatprep.mubr.msk.f32.mxu1 %vm682_vm2, %v659_v9  ;;  %v623_v13 = vadd.f32 %v3002_v43, %v622_v12  ;;  %v3126_v9 = vcombine.high %v1289_v6, %v1293_v7  ;;  %v1297_v10 = vld [vmem:[#allocation3 + $0x280] sm:$0xff]  ;;  %v3125_v12 = vcombine.low %v1289_v6, %v1293_v7 }
 0x12c   : > { %3284 = vmatmul.mubr.msk.f32.gmra.mrb[8].mxu1 %vm682_vm2, %v660_v8  ;;  %v662_v14 = vmax.f32 %v628_v11, 0.0  ;;  %v3117_v8 = vcombine.low %v1281_v2, %v1285_v3  ;;  %v1301_v11 = vld [vmem:[#allocation3 + $0x2a0] sm:$0xff]  ;;  %v1250_v2 = vld [vmem:[#allocation3 + $0x108] sm:$0xff] }
 0x12d   : > { %v661_v15 = vmax.f32 %v623_v13, 0.0  ;;  %v3251_v16 = vpop.f32.mrb[12].mxu0  ;;  %v3134_v13 = vcombine.high %v1297_v10, %v1301_v11  ;;  %v1254_v3 = vld [vmem:[#allocation3 + $0x128] sm:$0xff] }
 0x12e   : > { %v638_v17 = vadd.f32 %v3251_v16, %v3002_v43  ;;  %v632_v18 = vpop.f32.mrb[13].mxu0  ;;  %v3133_v16 = vcombine.low %v1297_v10, %v1301_v11  ;;  %v3088_v11 = vcombine.high %v1250_v2, %v1254_v3 }
 0x12f   : > { %3286 = vmatprep.mubr.msk.f32.mxu1 %vm682_vm2, %v661_v15  ;;  %v633_v19 = vadd.f32 %v3002_v43, %v632_v18  ;;  %v1309_v15 = vld [vmem:[#allocation3 + $0x2e0] sm:$0xff] }
 0x130   : > { %3287 = vmatmul.mubr.msk.f32.gmra.mrb[10].mxu1 %vm682_vm2, %v662_v14  ;;  %v664_v20 = vmax.f32 %v638_v17, 0.0  ;;  %v1305_v14 = vld [vmem:[#allocation3 + $0x2c0] sm:$0xff] }
 0x131   : > { %v663_v21 = vmax.f32 %v633_v19, 0.0  ;;  %v3254_v22 = vpop.f32.mrb[14].mxu0  ;;  %v3142_v17 = vcombine.high %v1305_v14, %v1309_v15  ;;  %v1313_v18 = vld [vmem:[#allocation3 + $0x300] sm:$0xff] }
 0x132   : > { %v648_v23 = vadd.f32 %v3254_v22, %v3002_v43  ;;  %v642_v24 = vpop.f32.mrb[15].mxu0  ;;  %v1317_v19 = vld [vmem:[#allocation3 + $0x320] sm:$0xff] }
 0x133   : > { %3289 = vmatprep.mubr.msk.f32.mxu1 %vm682_vm2, %v663_v21  ;;  %v643_v25 = vadd.f32 %v3002_v43, %v642_v24  ;;  %v1237_v43 = vld [vmem:[#allocation3 + $0xa0] sm:$0xff]  ;;  %v3150_v21 = vcombine.high %v1313_v18, %v1317_v19  ;;  %v3149_v24 = vcombine.low %v1313_v18, %v1317_v19  ;;  %v3087_v19 = vcombine.low %v1250_v2, %v1254_v3  ;;  %v1318_v2 = vld [vmem:[#allocation3 + $0x328] sm:$0xff] }
 0x134   : > { %3290 = vmatmul.mubr.msk.f32.gmra.mrb[12].mxu1 %vm682_vm2, %v664_v20  ;;  %v666_v26 = vmax.f32 %v648_v23, 0.0  ;;  %v3070_v45 = vcombine.high %v1233_v42, %v1237_v43  ;;  %v3069_v48 = vcombine.low %v1233_v42, %v1237_v43  ;;  %v3141_v20 = vcombine.low %v1305_v14, %v1309_v15  ;;  %v1321_v22 = vld [vmem:[#allocation3 + $0x340] sm:$0xff]  ;;  %v1262_v14 = vld [vmem:[#allocation3 + $0x168] sm:$0xff] }
 0x135   : > { %v665_v27 = vmax.f32 %v643_v25, 0.0  ;;  %v1325_v23 = vld [vmem:[#allocation3 + $0x360] sm:$0xff] }
 0x136   : > { %2031 = vmatprep.subr.bf16.mxu1 %v3070_v45  ;;  %v3158_v25 = vcombine.high %v1321_v22, %v1325_v23  ;;  %v3064_v45 = vcombine.high %v1226_v35, %v1230_v37 }
 0x137   : > { %3292 = vmatprep.mubr.msk.f32.mxu1 %vm682_vm2, %v665_v27  ;;  %2032 = vmatpush1.bf16.msra.mxu1 %v3069_v48  ;;  %v3856_v27 = vld [vmem:[%s4481_s4] ss:$0 sm:$0xff]  ;;  %v1238_v48 = vld [vmem:[#allocation3 + $0xa8] sm:$0xff] }
 0x138   : > { %3293 = vmatmul.mubr.msk.f32.gmra.mrb[14].mxu1 %vm682_vm2, %v666_v26  ;;  %2033 = vmatprep.subr.bf16.mxu1 %v3078_v49  ;;  %v3157_v26 = vcombine.low %v1321_v22, %v1325_v23  ;;  %v3071_v33 = vcombine.low %v1234_v47, %v1238_v48 }
 0x13b   : > { %2034 = vmatpush1.bf16.msra.mxu1 %v3077_v52 }
 0x13c   : > { %2035 = vmatprep.subr.bf16.mxu1 %v3086_v53  ;;  %v3063_v53 = vcombine.low %v1226_v35, %v1230_v37 }
 0x13f   : > { %2036 = vmatpush1.bf16.msra.mxu1 %v3085_v56  ;;  %v3072_v56 = vcombine.high %v1234_v47, %v1238_v48 }
 0x140   : > { %2037 = vmatprep.subr.bf16.mxu1 %v3094_v57 }
 0x143   : > { %2038 = vmatpush1.bf16.msra.mxu1 %v3093_v60 }
 0x144   : > { %2039 = vmatprep.subr.bf16.mxu1 %v3102_v61 }
 0x147   : > { %2040 = vmatpush1.bf16.msra.mxu1 %v3101_v0  ;;  %v3080_v0 = vcombine.high %v1242_v58, %v1246_v59 }
 0x148   : > { %2041 = vmatprep.subr.bf16.mxu1 %v3110_v1 }
 0x14b   : > { %2042 = vmatpush1.bf16.msra.mxu1 %v3109_v4 }
 0x14c   : > { %2043 = vmatprep.subr.bf16.mxu1 %v3118_v5 }
 0x14f   : > { %2044 = vmatpush1.bf16.msra.mxu1 %v3117_v8  ;;  %v3079_v8 = vcombine.low %v1242_v58, %v1246_v59 }
 0x150   : > { %2045 = vmatprep.subr.bf16.mxu1 %v3126_v9 }
 0x153   : > { %2046 = vmatpush1.bf16.msra.mxu1 %v3125_v12 }
 0x154   : > { %2047 = vmatprep.subr.bf16.mxu1 %v3134_v13  ;;  %v1258_v13 = vld [vmem:[#allocation3 + $0x148] sm:$0xff] }
 0x155   : > { %v3096_v22 = vcombine.high %v1258_v13, %v1262_v14 }
 0x157   : > { %2048 = vmatpush1.bf16.msra.mxu1 %v3133_v16 }
 0x158   : > { %2049 = vmatprep.subr.bf16.mxu1 %v3142_v17 }
 0x15b   : > { %2050 = vmatpush1.bf16.msra.mxu1 %v3141_v20 }
 0x15c   : > { %2051 = vmatprep.subr.bf16.mxu1 %v3150_v21 }
 0x15f   : > { %2052 = vmatpush1.bf16.msra.mxu1 %v3149_v24  ;;  %v1266_v24 = vld [vmem:[#allocation3 + $0x188] sm:$0xff] }
 0x160   : > { %2053 = vmatprep.subr.bf16.mxu1 %v3158_v25  ;;  %v1270_v25 = vld [vmem:[#allocation3 + $0x1a8] sm:$0xff] }
 0x161   : > { %v3104_v37 = vcombine.high %v1266_v24, %v1270_v25 }
 0x163   : > { %2054 = vmatpush1.bf16.msra.mxu1 %v3157_v26 }
 0x1ef   : > { %v3273_v28 = vpop.f32.mrb[0].mxu1 }
 0x1f0   : > { %v803_v29 = vadd.f32 %v3273_v28, %v3856_v27  ;;  %v797_v31 = vpop.f32.mrb[1].mxu1 }
 0x1f1   : > { %v798_v32 = vadd.f32 %v3856_v27, %v797_v31 }
 0x1f2   : > { %v877_v34 = vmax.f32 %v803_v29, 0.0 }
 0x1f3   : > { %v876_v38 = vmax.f32 %v798_v32, 0.0  ;;  %v3276_v40 = vpop.f32.mrb[2].mxu1  ;;  %v3095_v32 = vcombine.low %v1258_v13, %v1262_v14  ;;  %v1334_v14 = vld [vmem:[#allocation3 + $0x3a8] sm:$0xff] }
 0x1f4   : > { %v813_v41 = vadd.f32 %v3276_v40, %v3856_v27  ;;  %v807_v42 = vpop.f32.mrb[3].mxu1  ;;  %v1274_v40 = vld [vmem:[#allocation3 + $0x1c8] sm:$0xff] }
 0x1f5   : > { %v940_v43 = vpack.c.bf16 %v877_v34, %v876_v38  ;;  %v808_v44 = vadd.f32 %v3856_v27, %v807_v42  ;;  %892 = vxpose.xlu0.b32.start [1/16] %v876_v38, 128 }
 0x1f6   : > { %v879_v46 = vmax.f32 %v813_v41, 0.0  ;;  %v1278_v41 = vld [vmem:[#allocation3 + $0x1e8] sm:$0xff] }
 0x1f7   : > { %v878_v49 = vmax.f32 %v808_v44, 0.0  ;;  %1089 = vmatmul.mubr.bf16.vlgmr.msra.gmra.mrb[16].mxu0 %v940_v43  ;;  %v3279_v50 = vpop.f32.mrb[4].mxu1 }
 0x1f8   : > { %v3863_v51 = vadd.f32 %v3279_v50, %v3856_v27  ;;  %v817_v52 = vpop.f32.mrb[5].mxu1  ;;  %1098 = vmatprep.mubr.bf16.mxu0 %v3554_v30  ;;  %2141 = vmatpush1.bf16.msra.mxu0 %v3055_v39 }
 0x1f9   : > { %v941_v54 = vpack.c.bf16 %v879_v46, %v878_v49  ;;  %893 = vxpose.xlu0.b32.cont [2/16] %v877_v34, 128  ;;  %v818_v55 = vadd.f32 %v3856_v27, %v817_v52  ;;  %2142 = vmatprep.subr.bf16.mxu0 %v3064_v45  ;;  %v1286_v52 = vld [vmem:[#allocation3 + $0x228] sm:$0xff] }
 0x1fa   : > { %v881_v57 = vmax.f32 %v3863_v51, 0.0  ;;  %v1282_v51 = vld [vmem:[#allocation3 + $0x208] sm:$0xff] }
 0x1fb   : > { %v880_v60 = vmax.f32 %v818_v55, 0.0  ;;  %v3282_v61 = vpop.f32.mrb[6].mxu1  ;;  %v3119_v58 = vcombine.low %v1282_v51, %v1286_v52 }
 0x1fc   : > { %v3872_v62 = vadd.f32 %v3282_v61, %v3856_v27  ;;  %v827_v63 = vpop.f32.mrb[7].mxu1  ;;  %2143 = vmatpush1.bf16.msra.mxu0 %v3063_v53  ;;  %v1302_v61 = vld [vmem:[#allocation3 + $0x2a8] sm:$0xff] }
 0x1fd   : > { %v942_v36 = vpack.c.bf16 %v881_v57, %v880_v60  ;;  %894 = vxpose.xlu0.b32.cont [3/16] %v878_v49, 128  ;;  %v828_v39 = vadd.f32 %v3856_v27, %v827_v63  ;;  %2144 = vmatprep.subr.bf16.mxu0 %v3072_v56  ;;  %v3112_v49 = vcombine.high %v1274_v40, %v1278_v41 }
 0x1fe   : > { %v883_v1 = vmax.f32 %v3872_v62, 0.0  ;;  %v3120_v56 = vcombine.high %v1282_v51, %v1286_v52 }
 0x1ff   : > { %1099 = vmatmul.mubr.bf16.gmra.mrb[20].mxu0 %v941_v54  ;;  %v882_v4 = vmax.f32 %v828_v39, 0.0  ;;  %v3285_v5 = vpop.f32.mrb[8].mxu1  ;;  %v3111_v54 = vcombine.low %v1274_v40, %v1278_v41  ;;  %v964_v41 = vld [vmem:[%s4483_s6] sm:$0x3] }
 0x200   : > { %1108 = vmatprep.mubr.bf16.mxu0 %v3554_v30  ;;  %v3878_v6 = vadd.f32 %v3285_v5, %v3856_v27  ;;  %v837_v7 = vpop.f32.mrb[9].mxu1  ;;  %2145 = vmatpush1.bf16.msra.mxu0 %v3071_v33  ;;  %v1306_v33 = vld [vmem:[#allocation3 + $0x2c8] sm:$0xff] }
 0x201   : > { %895 = vxpose.xlu0.b32.cont [4/16] %v879_v46, 128  ;;  %v943_v9 = vpack.c.bf16 %v883_v1, %v882_v4  ;;  %v3883_v10 = vadd.f32 %v3856_v27, %v837_v7  ;;  %2146 = vmatprep.subr.bf16.mxu0 %v3080_v0  ;;  %v3103_v46 = vcombine.low %v1266_v24, %v1270_v25  ;;  %v1322_v5 = vld [vmem:[#allocation3 + $0x348] sm:$0xff]  ;;  %v1219_v25 = vld [vmem:[#allocation3 + $0x10] sm:$0xff] }
 0x202   : > { %v885_v12 = vmax.f32 %v3878_v6, 0.0  ;;  %v1326_v6 = vld [vmem:[#allocation3 + $0x368] sm:$0xff] }
 0x203   : > { %v884_v15 = vmax.f32 %v3883_v10, 0.0  ;;  %v3288_v16 = vpop.f32.mrb[10].mxu1  ;;  %v1329_v10 = vld [vmem:[#allocation3 + $0x380] sm:$0xff] }
 0x204   : > { %v3888_v17 = vadd.f32 %v3288_v16, %v3856_v27  ;;  %v847_v18 = vpop.f32.mrb[11].mxu1  ;;  %2147 = vmatpush1.bf16.msra.mxu0 %v3079_v8  ;;  %v3160_v8 = vcombine.high %v1322_v5, %v1326_v6 }
 0x205   : > { %896 = vxpose.xlu0.b32.cont [5/16] %v880_v60, 128  ;;  %v944_v20 = vpack.c.bf16 %v885_v12, %v884_v15  ;;  %v3893_v21 = vadd.f32 %v3856_v27, %v847_v18  ;;  %2148 = vmatprep.subr.bf16.mxu0 %v3088_v11  ;;  %v1298_v60 = vld [vmem:[#allocation3 + $0x288] sm:$0xff]  ;;  %v1333_v11 = vld [vmem:[#allocation3 + $0x3a0] sm:$0xff] }
 0x206   : > { %v887_v23 = vmax.f32 %v3888_v17, 0.0  ;;  %v3136_v62 = vcombine.high %v1298_v60, %v1302_v61  ;;  %v3135_v39 = vcombine.low %v1298_v60, %v1302_v61  ;;  %v3166_v13 = vcombine.high %v1329_v10, %v1333_v11  ;;  %v1341_v18 = vld [vmem:[#allocation3 + $0x3e0] sm:$0xff] }
 0x207   : > { %1109 = vmatmul.mubr.bf16.gmra.mrb[24].mxu0 %v942_v36  ;;  %v886_v26 = vmax.f32 %v3893_v21, 0.0  ;;  %v3291_v28 = vpop.f32.mrb[12].mxu1  ;;  %v1310_v36 = vld [vmem:[#allocation3 + $0x2e8] sm:$0xff] }
 0x208   : > { %1118 = vmatprep.mubr.bf16.mxu0 %v3554_v30  ;;  %v3899_v29 = vadd.f32 %v3291_v28, %v3856_v27  ;;  %v857_v31 = vpop.f32.mrb[13].mxu1  ;;  %2149 = vmatpush1.bf16.msra.mxu0 %v3087_v19  ;;  %v3144_v0 = vcombine.high %v1306_v33, %v1310_v36  ;;  %v3143_v3 = vcombine.low %v1306_v33, %v1310_v36  ;;  %v1338_v19 = vld [vmem:[#allocation3 + $0x3c8] sm:$0xff]  ;;  %v1220_v28 = vld [vmem:[#allocation3 + $0x18] sm:$0xff] }
 0x209   : > { %897 = vxpose.xlu0.b32.cont [6/16] %v881_v57, 128  ;;  %v945_v34 = vpack.c.bf16 %v887_v23, %v886_v26  ;;  %v3904_v35 = vadd.f32 %v3856_v27, %v857_v31  ;;  %2150 = vmatprep.subr.bf16.mxu0 %v3096_v22  ;;  %v1290_v57 = vld [vmem:[#allocation3 + $0x248] sm:$0xff]  ;;  %v1224_v31 = vld [vmem:[#allocation3 + $0x38] sm:$0xff] }
 0x20a   : > { %v889_v38 = vmax.f32 %v3899_v29, 0.0  ;;  %2055 = vmatprep.subr.bf16.mxu1 %v3166_v13  ;;  %v1342_v21 = vld [vmem:[#allocation3 + $0x3e8] sm:$0xff] }
 0x20b   : > { %v888_v42 = vmax.f32 %v3904_v35, 0.0  ;;  %v3294_v43 = vpop.f32.mrb[14].mxu1  ;;  %v3176_v24 = vcombine.high %v1338_v19, %v1342_v21  ;;  %v3929_v35 = vcombine.high %v1220_v28, %v1224_v31 }
 0x20c   : > { %v3909_v44 = vadd.f32 %v3294_v43, %v3856_v27  ;;  %v867_v45 = vpop.f32.mrb[15].mxu1  ;;  %2151 = vmatpush1.bf16.msra.mxu0 %v3095_v32 }
 0x20d   : > { %898 = vxpose.xlu0.b32.cont [7/16] %v882_v4, 128  ;;  %v946_v47 = vpack.c.bf16 %v889_v38, %v888_v42  ;;  %v868_v48 = vadd.f32 %v3856_v27, %v867_v45  ;;  %2152 = vmatprep.subr.bf16.mxu0 %v3104_v37  ;;  %v1294_v27 = vld [vmem:[#allocation3 + $0x268] sm:$0xff]  ;;  %v966_v37 = vlaneseq }
 0x20e   : > { %v891_v50 = vmax.f32 %v3909_v44, 0.0  ;;  %v3128_v59 = vcombine.high %v1290_v57, %v1294_v27  ;;  %v3127_v63 = vcombine.low %v1290_v57, %v1294_v27  ;;  %v1231_v27 = vld [vmem:[#allocation3 + $0x70] sm:$0xff] }
 0x20f   : > { %1119 = vmatmul.mubr.bf16.gmra.mrb[28].mxu0 %v943_v9  ;;  %v890_v53 = vmax.f32 %v868_v48, 0.0  ;;  %v3159_v9 = vcombine.low %v1322_v5, %v1326_v6  ;;  %v1240_v5 = vld [vmem:[#allocation3 + $0xb8] sm:$0xff] }
 0x210   : > { %1128 = vmatprep.mubr.bf16.mxu0 %v3554_v30  ;;  %2153 = vmatpush1.bf16.msra.mxu0 %v3103_v46 }
 0x211   : > { %899 = vxpose.xlu0.b32.cont [8/16] %v883_v1, 128  ;;  %v947_v55 = vpack.c.bf16 %v891_v50, %v890_v53  ;;  %2154 = vmatprep.subr.bf16.mxu0 %v3112_v49  ;;  %v1314_v1 = vld [vmem:[#allocation3 + $0x308] sm:$0xff] }
 0x212   : > { %v3152_v4 = vcombine.high %v1314_v1, %v1318_v2  ;;  %v3151_v7 = vcombine.low %v1314_v1, %v1318_v2 }
 0x214   : > { %2155 = vmatpush1.bf16.msra.mxu0 %v3111_v54 }
 0x215   : > { %900 = vxpose.xlu0.b32.cont [9/16] %v884_v15, 128  ;;  %2156 = vmatprep.subr.bf16.mxu0 %v3120_v56  ;;  %v3165_v15 = vcombine.low %v1329_v10, %v1333_v11 }
 0x217   : > { %1129 = vmatmul.mubr.bf16.gmra.mrb[32].mxu0 %v944_v20  ;;  %2056 = vmatpush1.bf16.msra.mxu1 %v3165_v15  ;;  %v1243_v15 = vld [vmem:[#allocation3 + $0xd0] sm:$0xff] }
 0x218   : > { %1138 = vmatprep.mubr.bf16.mxu0 %v3554_v30  ;;  %2157 = vmatpush1.bf16.msra.mxu0 %v3119_v58  ;;  %v1228_v58 = vld [vmem:[#allocation3 + $0x58] sm:$0xff] }
 0x219   : > { %901 = vxpose.xlu0.b32.cont [10/16] %v885_v12, 128  ;;  %2158 = vmatprep.subr.bf16.mxu0 %v3128_v59  ;;  %v1330_v12 = vld [vmem:[#allocation3 + $0x388] sm:$0xff]  ;;  %v1232_v59 = vld [vmem:[#allocation3 + $0x78] sm:$0xff] }
 0x21a   : > { %v3167_v16 = vcombine.low %v1330_v12, %v1334_v14  ;;  %v3168_v17 = vcombine.high %v1330_v12, %v1334_v14  ;;  %v3966_v10 = vcombine.low %v1228_v58, %v1232_v59 }
 0x21c   : > { %2159 = vmatpush1.bf16.msra.mxu0 %v3127_v63 }
 0x21d   : > { %902 = vxpose.xlu0.b32.cont [11/16] %v886_v26, 128  ;;  %2160 = vmatprep.subr.bf16.mxu0 %v3136_v62  ;;  %v1223_v26 = vld [vmem:[#allocation3 + $0x30] sm:$0xff] }
 0x21e   : > { %v3058_v29 = vcombine.high %v1219_v25, %v1223_v26  ;;  %v3057_v32 = vcombine.low %v1219_v25, %v1223_v26 }
 0x21f   : > { %1139 = vmatmul.mubr.bf16.gmra.mrb[36].mxu0 %v945_v34  ;;  %v3927_v34 = vcombine.low %v1220_v28, %v1224_v31  ;;  %v1251_v31 = vld [vmem:[#allocation3 + $0x110] sm:$0xff] }
 0x220   : > { %1148 = vmatprep.mubr.bf16.mxu0 %v3554_v30  ;;  %2161 = vmatpush1.bf16.msra.mxu0 %v3135_v39  ;;  %v3956_v39 = vcombine.high %v1228_v58, %v1232_v59  ;;  %v1263_v58 = vld [vmem:[#allocation3 + $0x170] sm:$0xff]  ;;  %v1260_v59 = vld [vmem:[#allocation3 + $0x158] sm:$0xff] }
 0x221   : > { %903 = vxpose.xlu0.b32.cont [12/16] %v887_v23, 128  ;;  %2162 = vmatprep.subr.bf16.mxu0 %v3144_v0  ;;  %v3175_v23 = vcombine.low %v1338_v19, %v1342_v21  ;;  %v1235_v0 = vld [vmem:[#allocation3 + $0x90] sm:$0xff]  ;;  %v1248_v19 = vld [vmem:[#allocation3 + $0xf8] sm:$0xff] }
 0x224   : > { %2163 = vmatpush1.bf16.msra.mxu0 %v3143_v3  ;;  %v1239_v3 = vld [vmem:[#allocation3 + $0xb0] sm:$0xff] }
 0x225   : > { %904 = vxpose.xlu0.b32.cont [13/16] %v888_v42, 128  ;;  %2164 = vmatprep.subr.bf16.mxu0 %v3152_v4  ;;  %v1236_v4 = vld [vmem:[#allocation3 + $0x98] sm:$0xff]  ;;  %v3074_v13 = vcombine.high %v1235_v0, %v1239_v3 }
 0x226   : > { %v3969_v14 = vcombine.high %v1236_v4, %v1240_v5 }
 0x227   : > { %1149 = vmatmul.mubr.bf16.gmra.mrb[40].mxu0 %v946_v47 }
 0x228   : > { %1158 = vmatprep.mubr.bf16.mxu0 %v3554_v30  ;;  %2165 = vmatpush1.bf16.msra.mxu0 %v3151_v7  ;;  %v1337_v30 = vld [vmem:[#allocation3 + $0x3c0] sm:$0xff] }
 0x229   : > { %905 = vxpose.xlu0.b32.cont [14/16] %v889_v38, 128  ;;  %2166 = vmatprep.subr.bf16.mxu0 %v3160_v8  ;;  %v3174_v20 = vcombine.high %v1337_v30, %v1341_v18  ;;  %v3173_v22 = vcombine.low %v1337_v30, %v1341_v18  ;;  %v3932_v38 = vshrl.u32 %v966_v37, 7  ;;  %v1247_v30 = vld [vmem:[#allocation3 + $0xf0] sm:$0xff]  ;;  %v1244_v18 = vld [vmem:[#allocation3 + $0xd8] sm:$0xff] }
 0x22a   : > { %v3082_v28 = vcombine.high %v1243_v15, %v1247_v30 }
 0x22b   : > { %2057 = vmatprep.subr.bf16.mxu1 %v3174_v20  ;;  %4512 = vst [vmem:[#allocation11_spill] sm:$0xff] %v3932_v38  ;;  %v4495_v40 = vsub.s32 0, %v3932_v38  ;;  %v4494_v42 = vsub.s32 1, %v3932_v38 }
 0x22c   : > { %2167 = vmatpush1.bf16.msra.mxu0 %v3159_v9  ;;  %2058 = vmatpush1.bf16.msra.mxu1 %v3173_v22 }
 0x22d   : > { %906 = vxpose.xlu0.b32.cont [15/16] %v890_v53, 128  ;;  %2168 = vmatprep.subr.bf16.mxu0 %v3168_v17  ;;  %v3941_v43 = vrot.slane %v964_v41, %v4495_v40  ;;  %v3945_v44 = vrot.slane %v964_v41, %v4494_v42  ;;  %v1255_v41 = vld [vmem:[#allocation3 + $0x130] sm:$0xff]  ;;  %v1324_v40 = vld [vmem:[#allocation3 + $0x358] sm:$0xff] }
 0x22e   : > { %2253 = vmatprep.subr.bf16.mxu1 %v3058_v29  ;;  %v3980_v29 = vcombine.high %v1244_v18, %v1248_v19  ;;  %v1327_v42 = vld [vmem:[#allocation3 + $0x370] sm:$0xff] }
 0x22f   : > { %1159 = vmatmul.mubr.bf16.gmra.mrb[44].mxu0 %v947_v55  ;;  %v1227_v55 = vld [vmem:[#allocation3 + $0x50] sm:$0xff] }
 0x230   : > { %2169 = vmatpush1.bf16.msra.mxu0 %v3167_v16  ;;  %v3066_v36 = vcombine.high %v1227_v55, %v1231_v27  ;;  %v3065_v9 = vcombine.low %v1227_v55, %v1231_v27 }
 0x231   : > { %907 = vxpose.xlu0.b32.end [16/16] %v891_v50, 128  ;;  %2170 = vmatprep.subr.bf16.mxu0 %v3176_v24  ;;  %v3976_v24 = vcombine.low %v1236_v4, %v1240_v5 }
 0x234   : > { %2171 = vmatpush1.bf16.msra.mxu0 %v3175_v23  ;;  %v3073_v23 = vcombine.low %v1235_v0, %v1239_v3  ;;  %v3089_v0 = vcombine.low %v1251_v31, %v1255_v41 }
 0x235   : > { %2366 = vmatprep.subr.bf16.mxu0 %v3929_v35 }
 0x2ca   : > { %v1090_v45 = vpop.f32.mrb[16].mxu0 }
 0x2cb   : > { %v1091_v46 = vadd.f32 %v1090_v45, %v3941_v43  ;;  %v1092_v47 = vpop.f32.mrb[17].mxu0  ;;  %v1252_v45 = vld [vmem:[#allocation3 + $0x118] sm:$0xff] }
 0x2cc   : > { %v1093_v48 = vadd.f32 %v1092_v47, %v3945_v44  ;;  %v1094_v49 = vpop.f32.mrb[18].mxu0 }
 0x2cd   : > { %v1095_v50 = vadd.f32 %v1094_v49, %v3941_v43  ;;  %v1096_v51 = vpop.f32.mrb[19].mxu0  ;;  %v1169_v53 = vmax.f32 %v1091_v46, 0.0  ;;  %v1256_v46 = vld [vmem:[#allocation3 + $0x138] sm:$0xff] }
 0x2ce   : > { %v1097_v52 = vadd.f32 %v1096_v51, %v3945_v44  ;;  %v1170_v56 = vmax.f32 %v1093_v48, 0.0  ;;  %v3990_v51 = vcombine.low %v1244_v18, %v1248_v19  ;;  %v3993_v55 = vcombine.high %v1252_v45, %v1256_v46 }
 0x2cf   : > { %v1171_v54 = vmax.f32 %v1095_v50, 0.0  ;;  %v3081_v50 = vcombine.low %v1243_v15, %v1247_v30 }
 0x2d0   : > { %v1172_v57 = vmax.f32 %v1097_v52, 0.0 }
 0x2d1   : > { %v3951_v60 = vpack.c.bf16 %v1171_v54, %v1169_v53  ;;  %v3090_v54 = vcombine.high %v1251_v31, %v1255_v41  ;;  %v1279_v31 = vld [vmem:[#allocation3 + $0x1f0] sm:$0xff] }
 0x2d2   : > { %v3953_v61 = vpack.c.bf16 %v1172_v57, %v1170_v56  ;;  %v1100_v63 = vpop.f32.mrb[20].mxu0  ;;  %v1259_v56 = vld [vmem:[#allocation3 + $0x150] sm:$0xff] }
 0x2d3   : > { %v1101_v62 = vadd.f32 %v1100_v63, %v3941_v43  ;;  %v1102_v33 = vpop.f32.mrb[21].mxu0  ;;  %v1264_v63 = vld [vmem:[#allocation3 + $0x178] sm:$0xff]  ;;  %v3098_v4 = vcombine.high %v1259_v56, %v1263_v58 }
 0x2d4   : > { %v1103_v1 = vadd.f32 %v1102_v33, %v3945_v44  ;;  %v1104_v2 = vpop.f32.mrb[22].mxu0  ;;  %2059 = vmatprep.mubr.bf16.mxu1 %v3953_v61  ;;  %2172 = vmatprep.mubr.bf16.mxu0 %v3953_v61  ;;  %v4004_v5 = vcombine.high %v1260_v59, %v1264_v63  ;;  %v4014_v30 = vcombine.low %v1260_v59, %v1264_v63  ;;  %v1288_v59 = vld [vmem:[#allocation3 + $0x238] sm:$0xff] }
 0x2d5   : > { %v1105_v6 = vadd.f32 %v1104_v2, %v3941_v43  ;;  %v1106_v7 = vpop.f32.mrb[23].mxu0  ;;  %2060 = vmatmul.mubr.bf16.vlgmr.msra.gmra.mrb[16].mxu1 %v3951_v60  ;;  %2173 = vmatmul.mubr.bf16.vlgmr.msra.gmra.mrb[48].mxu0 %v3951_v60  ;;  %v1173_v11 = vmax.f32 %v1101_v62, 0.0 }
 0x2d6   : > { %v1107_v8 = vadd.f32 %v1106_v7, %v3945_v44  ;;  %2254 = vmatpush1.bf16.msra.mxu1 %v3057_v32  ;;  %2367 = vmatpush1.bf16.msra.mxu0 %v3927_v34  ;;  %v1174_v16 = vmax.f32 %v1103_v1, 0.0  ;;  %v4000_v1 = vcombine.low %v1252_v45, %v1256_v46 }
 0x2d7   : > { %v1175_v12 = vmax.f32 %v1105_v6, 0.0  ;;  %2255 = vmatprep.subr.bf16.mxu1 %v3066_v36  ;;  %2368 = vmatprep.subr.bf16.mxu0 %v3956_v39  ;;  %v1267_v6 = vld [vmem:[#allocation3 + $0x190] sm:$0xff] }
 0x2d8   : > { %v1176_v17 = vmax.f32 %v1107_v8, 0.0 }
 0x2d9   : > { %v3971_v20 = vpack.c.bf16 %v1175_v12, %v1173_v11  ;;  %v1268_v11 = vld [vmem:[#allocation3 + $0x198] sm:$0xff] }
 0x2da   : > { %v3973_v21 = vpack.c.bf16 %v1176_v17, %v1174_v16  ;;  %2256 = vmatpush1.bf16.msra.mxu1 %v3065_v9  ;;  %v1110_v22 = vpop.f32.mrb[24].mxu0  ;;  %2369 = vmatpush1.bf16.msra.mxu0 %v3966_v10  ;;  %v1271_v9 = vld [vmem:[#allocation3 + $0x1b0] sm:$0xff]  ;;  %v1272_v12 = vld [vmem:[#allocation3 + $0x1b8] sm:$0xff]  ;;  %v3097_v17 = vcombine.low %v1259_v56, %v1263_v58 }
 0x2db   : > { %v1111_v25 = vadd.f32 %v1110_v22, %v3941_v43  ;;  %v1112_v26 = vpop.f32.mrb[25].mxu0  ;;  %2257 = vmatprep.subr.bf16.mxu1 %v3074_v13  ;;  %2370 = vmatprep.subr.bf16.mxu0 %v3969_v14  ;;  %v3106_v22 = vcombine.high %v1267_v6, %v1271_v9  ;;  %v1284_v58 = vld [vmem:[#allocation3 + $0x218] sm:$0xff] }
 0x2dc   : > { %v1113_v32 = vadd.f32 %v1112_v26, %v3945_v44  ;;  %v1114_v37 = vpop.f32.mrb[26].mxu0  ;;  %2069 = vmatprep.mubr.bf16.mxu1 %v3973_v21  ;;  %2182 = vmatprep.mubr.bf16.mxu0 %v3973_v21 }
 0x2dd   : > { %v1115_v47 = vadd.f32 %v1114_v37, %v3941_v43  ;;  %v1116_v48 = vpop.f32.mrb[27].mxu0  ;;  %2070 = vmatmul.mubr.bf16.gmra.mrb[20].mxu1 %v3971_v20  ;;  %2183 = vmatmul.mubr.bf16.gmra.mrb[52].mxu0 %v3971_v20  ;;  %v1177_v52 = vmax.f32 %v1111_v25, 0.0  ;;  %v1275_v25 = vld [vmem:[#allocation3 + $0x1d0] sm:$0xff]  ;;  %v1280_v37 = vld [vmem:[#allocation3 + $0x1f8] sm:$0xff] }
 0x2de   : > { %v1117_v49 = vadd.f32 %v1116_v48, %v3945_v44  ;;  %2258 = vmatpush1.bf16.msra.mxu1 %v3073_v23  ;;  %2371 = vmatpush1.bf16.msra.mxu0 %v3976_v24  ;;  %v1178_v57 = vmax.f32 %v1113_v32, 0.0  ;;  %v4017_v23 = vcombine.high %v1268_v11, %v1272_v12  ;;  %v1276_v32 = vld [vmem:[#allocation3 + $0x1d8] sm:$0xff]  ;;  %v4024_v48 = vcombine.low %v1268_v11, %v1272_v12 }
 0x2df   : > { %v1179_v53 = vmax.f32 %v1115_v47, 0.0  ;;  %2259 = vmatprep.subr.bf16.mxu1 %v3082_v28  ;;  %2372 = vmatprep.subr.bf16.mxu0 %v3980_v29  ;;  %v3105_v47 = vcombine.low %v1267_v6, %v1271_v9  ;;  %v1291_v9 = vld [vmem:[#allocation3 + $0x250] sm:$0xff] }
 0x2e0   : > { %v1180_v27 = vmax.f32 %v1117_v49, 0.0 }
 0x2e1   : > { %v3995_v62 = vpack.c.bf16 %v1179_v53, %v1177_v52  ;;  %v3114_v52 = vcombine.high %v1275_v25, %v1279_v31  ;;  %v4028_v53 = vcombine.high %v1276_v32, %v1280_v37 }
 0x2e2   : > { %v3997_v33 = vpack.c.bf16 %v1180_v27, %v1178_v57  ;;  %2260 = vmatpush1.bf16.msra.mxu1 %v3081_v50  ;;  %v1120_v36 = vpop.f32.mrb[28].mxu0  ;;  %2373 = vmatpush1.bf16.msra.mxu0 %v3990_v51  ;;  %v1287_v27 = vld [vmem:[#allocation3 + $0x230] sm:$0xff] }
 0x2e3   : > { %v1121_v2 = vadd.f32 %v1120_v36, %v3941_v43  ;;  %v1122_v3 = vpop.f32.mrb[29].mxu0  ;;  %2261 = vmatprep.subr.bf16.mxu1 %v3090_v54  ;;  %2374 = vmatprep.subr.bf16.mxu0 %v3993_v55  ;;  %v1283_v54 = vld [vmem:[#allocation3 + $0x210] sm:$0xff] }
 0x2e4   : > { %v1123_v7 = vadd.f32 %v1122_v3, %v3945_v44  ;;  %v1124_v8 = vpop.f32.mrb[30].mxu0  ;;  %2079 = vmatprep.mubr.bf16.mxu1 %v3997_v33  ;;  %2192 = vmatprep.mubr.bf16.mxu0 %v3997_v33  ;;  %v4038_v3 = vcombine.low %v1276_v32, %v1280_v37  ;;  %v1299_v37 = vld [vmem:[#allocation3 + $0x290] sm:$0xff] }
 0x2e5   : > { %v1125_v13 = vadd.f32 %v1124_v8, %v3941_v43  ;;  %v1126_v15 = vpop.f32.mrb[31].mxu0  ;;  %2080 = vmatmul.mubr.bf16.gmra.mrb[24].mxu1 %v3995_v62  ;;  %2193 = vmatmul.mubr.bf16.gmra.mrb[56].mxu0 %v3995_v62  ;;  %v1181_v18 = vmax.f32 %v1121_v2, 0.0  ;;  %v3113_v2 = vcombine.low %v1275_v25, %v1279_v31  ;;  %v4041_v8 = vcombine.high %v1284_v58, %v1288_v59 }
 0x2e6   : > { %v1127_v16 = vadd.f32 %v1126_v15, %v3945_v44  ;;  %2262 = vmatpush1.bf16.msra.mxu1 %v3089_v0  ;;  %2375 = vmatpush1.bf16.msra.mxu0 %v4000_v1  ;;  %v1182_v26 = vmax.f32 %v1123_v7, 0.0  ;;  %v3122_v7 = vcombine.high %v1283_v54, %v1287_v27  ;;  %v1292_v15 = vld [vmem:[#allocation3 + $0x258] sm:$0xff]  ;;  %v4048_v25 = vcombine.low %v1284_v58, %v1288_v59 }
 0x2e7   : > { %v1183_v19 = vmax.f32 %v1125_v13, 0.0  ;;  %2263 = vmatprep.subr.bf16.mxu1 %v3098_v4  ;;  %2376 = vmatprep.subr.bf16.mxu0 %v4004_v5  ;;  %v1295_v13 = vld [vmem:[#allocation3 + $0x270] sm:$0xff] }
 0x2e8   : > { %v1184_v28 = vmax.f32 %v1127_v16, 0.0  ;;  %v1296_v16 = vld [vmem:[#allocation3 + $0x278] sm:$0xff]  ;;  %v3130_v31 = vcombine.high %v1291_v9, %v1295_v13 }
 0x2e9   : > { %v4019_v41 = vpack.c.bf16 %v1183_v19, %v1181_v18  ;;  %v4052_v32 = vcombine.high %v1292_v15, %v1296_v16  ;;  %v4062_v58 = vcombine.low %v1292_v15, %v1296_v16 }
 0x2ea   : > { %v4021_v45 = vpack.c.bf16 %v1184_v28, %v1182_v26  ;;  %2264 = vmatpush1.bf16.msra.mxu1 %v3097_v17  ;;  %v1130_v46 = vpop.f32.mrb[32].mxu0  ;;  %2377 = vmatpush1.bf16.msra.mxu0 %v4014_v30 }
 0x2eb   : > { %v1131_v49 = vadd.f32 %v1130_v46, %v3941_v43  ;;  %v1132_v50 = vpop.f32.mrb[33].mxu0  ;;  %2265 = vmatprep.subr.bf16.mxu1 %v3106_v22  ;;  %2378 = vmatprep.subr.bf16.mxu0 %v4017_v23  ;;  %v3121_v22 = vcombine.low %v1283_v54, %v1287_v27  ;;  %v3129_v27 = vcombine.low %v1291_v9, %v1295_v13 }
 0x2ec   : > { %v1133_v56 = vadd.f32 %v1132_v50, %v3945_v44  ;;  %v1134_v57 = vpop.f32.mrb[34].mxu0  ;;  %2089 = vmatprep.mubr.bf16.mxu1 %v4021_v45  ;;  %2202 = vmatprep.mubr.bf16.mxu0 %v4021_v45  ;;  %v1300_v50 = vld [vmem:[#allocation3 + $0x298] sm:$0xff] }
 0x2ed   : > { %v1135_v63 = vadd.f32 %v1134_v57, %v3941_v43  ;;  %v1136_v36 = vpop.f32.mrb[35].mxu0  ;;  %2090 = vmatmul.mubr.bf16.gmra.mrb[28].mxu1 %v4019_v41  ;;  %2203 = vmatmul.mubr.bf16.gmra.mrb[60].mxu0 %v4019_v41  ;;  %v1185_v4 = vmax.f32 %v1131_v49, 0.0  ;;  %v1303_v49 = vld [vmem:[#allocation3 + $0x2b0] sm:$0xff] }
 0x2ee   : > { %v1137_v0 = vadd.f32 %v1136_v36, %v3945_v44  ;;  %2266 = vmatpush1.bf16.msra.mxu1 %v3105_v47  ;;  %2379 = vmatpush1.bf16.msra.mxu0 %v4024_v48  ;;  %v1186_v11 = vmax.f32 %v1133_v56, 0.0  ;;  %v3138_v36 = vcombine.high %v1299_v37, %v1303_v49  ;;  %v3137_v13 = vcombine.low %v1299_v37, %v1303_v49  ;;  %v1319_v37 = vld [vmem:[#allocation3 + $0x330] sm:$0xff]  ;;  %v1316_v49 = vld [vmem:[#allocation3 + $0x318] sm:$0xff] }
 0x2ef   : > { %v1187_v6 = vmax.f32 %v1135_v63, 0.0  ;;  %2267 = vmatprep.subr.bf16.mxu1 %v3114_v52  ;;  %2380 = vmatprep.subr.bf16.mxu0 %v4028_v53  ;;  %v1304_v52 = vld [vmem:[#allocation3 + $0x2b8] sm:$0xff] }
 0x2f0   : > { %v1188_v12 = vmax.f32 %v1137_v0, 0.0  ;;  %v4065_v0 = vcombine.high %v1300_v50, %v1304_v52  ;;  %v4072_v15 = vcombine.low %v1300_v50, %v1304_v52  ;;  %v1320_v50 = vld [vmem:[#allocation3 + $0x338] sm:$0xff] }
 0x2f1   : > { %v4043_v17 = vpack.c.bf16 %v1187_v6, %v1185_v4 }
 0x2f2   : > { %v4045_v18 = vpack.c.bf16 %v1188_v12, %v1186_v11  ;;  %2268 = vmatpush1.bf16.msra.mxu1 %v3113_v2  ;;  %v1140_v19 = vpop.f32.mrb[36].mxu0  ;;  %2381 = vmatpush1.bf16.msra.mxu0 %v4038_v3  ;;  %v1307_v2 = vld [vmem:[#allocation3 + $0x2d0] sm:$0xff]  ;;  %v1308_v11 = vld [vmem:[#allocation3 + $0x2d8] sm:$0xff] }
 0x2f3   : > { %v1141_v26 = vadd.f32 %v1140_v19, %v3941_v43  ;;  %v1142_v28 = vpop.f32.mrb[37].mxu0  ;;  %2269 = vmatprep.subr.bf16.mxu1 %v3122_v7  ;;  %2382 = vmatprep.subr.bf16.mxu0 %v4041_v8  ;;  %v1311_v7 = vld [vmem:[#allocation3 + $0x2f0] sm:$0xff]  ;;  %v1312_v12 = vld [vmem:[#allocation3 + $0x2f8] sm:$0xff] }
 0x2f4   : > { %v1143_v46 = vadd.f32 %v1142_v28, %v3945_v44  ;;  %v1144_v47 = vpop.f32.mrb[38].mxu0  ;;  %2099 = vmatprep.mubr.bf16.mxu1 %v4045_v18  ;;  %2212 = vmatprep.mubr.bf16.mxu0 %v4045_v18  ;;  %v3146_v28 = vcombine.high %v1307_v2, %v1311_v7 }
 0x2f5   : > { %v1145_v54 = vadd.f32 %v1144_v47, %v3941_v43  ;;  %v1146_v56 = vpop.f32.mrb[39].mxu0  ;;  %2100 = vmatmul.mubr.bf16.gmra.mrb[32].mxu1 %v4043_v17  ;;  %2213 = vmatmul.mubr.bf16.gmra.mrb[64].mxu0 %v4043_v17  ;;  %v1189_v59 = vmax.f32 %v1141_v26, 0.0 }
 0x2f6   : > { %v1147_v57 = vadd.f32 %v1146_v56, %v3945_v44  ;;  %2270 = vmatpush1.bf16.msra.mxu1 %v3121_v22  ;;  %2383 = vmatpush1.bf16.msra.mxu0 %v4048_v25  ;;  %v1190_v4 = vmax.f32 %v1143_v46, 0.0  ;;  %v1315_v46 = vld [vmem:[#allocation3 + $0x310] sm:$0xff] }
 0x2f7   : > { %v1191_v63 = vmax.f32 %v1145_v54, 0.0  ;;  %2271 = vmatprep.subr.bf16.mxu1 %v3130_v31  ;;  %2384 = vmatprep.subr.bf16.mxu0 %v4052_v32  ;;  %v4076_v31 = vcombine.high %v1308_v11, %v1312_v12 }
 0x2f8   : > { %v1192_v6 = vmax.f32 %v1147_v57, 0.0 }
 0x2f9   : > { %v4067_v19 = vpack.c.bf16 %v1191_v63, %v1189_v59  ;;  %v4086_v59 = vcombine.low %v1308_v11, %v1312_v12  ;;  %v4096_v11 = vcombine.low %v1316_v49, %v1320_v50 }
 0x2fa   : > { %v4069_v22 = vpack.c.bf16 %v1192_v6, %v1190_v4  ;;  %2272 = vmatpush1.bf16.msra.mxu1 %v3129_v27  ;;  %v1150_v9 = vpop.f32.mrb[40].mxu0  ;;  %2385 = vmatpush1.bf16.msra.mxu0 %v4062_v58  ;;  %v3145_v27 = vcombine.low %v1307_v2, %v1311_v7  ;;  %v3154_v4 = vcombine.high %v1315_v46, %v1319_v37 }
 0x2fb   : > { %v1151_v16 = vadd.f32 %v1150_v9, %v3941_v43  ;;  %v1152_v26 = vpop.f32.mrb[41].mxu0  ;;  %2273 = vmatprep.subr.bf16.mxu1 %v3138_v36  ;;  %2386 = vmatprep.subr.bf16.mxu0 %v4065_v0  ;;  %4513 = vst [vmem:[#allocation12_spill] sm:$0xff] %v4086_v59  ;;  %v4089_v6 = vcombine.high %v1316_v49, %v1320_v50  ;;  %v1323_v9 = vld [vmem:[#allocation3 + $0x350] sm:$0xff]  ;;  %4516 = vst [vmem:[#allocation15_spill] sm:$0xff] %v4096_v11  ;;  %v1336_v49 = vld [vmem:[#allocation3 + $0x3b8] sm:$0xff] }
 0x2fc   : > { %v1153_v47 = vadd.f32 %v1152_v26, %v3945_v44  ;;  %v1154_v54 = vpop.f32.mrb[42].mxu0  ;;  %2109 = vmatprep.mubr.bf16.mxu1 %v4069_v22  ;;  %2222 = vmatprep.mubr.bf16.mxu0 %v4069_v22  ;;  %v3153_v7 = vcombine.low %v1315_v46, %v1319_v37  ;;  %v1335_v46 = vld [vmem:[#allocation3 + $0x3b0] sm:$0xff]  ;;  %v1332_v37 = vld [vmem:[#allocation3 + $0x398] sm:$0xff] }
 0x2fd   : > { %v1155_v52 = vadd.f32 %v1154_v54, %v3941_v43  ;;  %v1156_v56 = vpop.f32.mrb[43].mxu0  ;;  %2110 = vmatmul.mubr.bf16.gmra.mrb[36].mxu1 %v4067_v19  ;;  %2223 = vmatmul.mubr.bf16.gmra.mrb[68].mxu0 %v4067_v19  ;;  %v1193_v63 = vmax.f32 %v1151_v16, 0.0  ;;  %4514 = vst [vmem:[#allocation13_spill] sm:$0xff] %v4089_v6 }
 0x2fe   : > { %v1157_v57 = vadd.f32 %v1156_v56, %v3945_v44  ;;  %2274 = vmatpush1.bf16.msra.mxu1 %v3137_v13  ;;  %2387 = vmatpush1.bf16.msra.mxu0 %v4072_v15  ;;  %v1194_v26 = vmax.f32 %v1153_v47, 0.0  ;;  %v1328_v56 = vld [vmem:[#allocation3 + $0x378] sm:$0xff] }
 0x2ff   : > { %v1195_v36 = vmax.f32 %v1155_v52, 0.0  ;;  %2275 = vmatprep.subr.bf16.mxu1 %v3146_v28  ;;  %2388 = vmatprep.subr.bf16.mxu0 %v4076_v31  ;;  %v3162_v28 = vcombine.high %v1323_v9, %v1327_v42  ;;  %v4100_v47 = vcombine.high %v1324_v40, %v1328_v56  ;;  %v1331_v52 = vld [vmem:[#allocation3 + $0x390] sm:$0xff] }
 0x300   : > { %v1196_v54 = vmax.f32 %v1157_v57, 0.0 }
 0x301   : > { %v4091_v13 = vpack.c.bf16 %v1195_v36, %v1193_v63 }
 0x302   : > { %v4093_v38 = vpack.c.bf16 %v1196_v54, %v1194_v26  ;;  %2276 = vmatpush1.bf16.msra.mxu1 %v3145_v27  ;;  %v1160_v2 = vpop.f32.mrb[44].mxu0  ;;  %2389 = vmatpush1.bf16.msra.mxu0 %v4086_v59  ;;  %v4110_v26 = vcombine.low %v1324_v40, %v1328_v56  ;;  %v1339_v59 = vld [vmem:[#allocation3 + $0x3d0] sm:$0xff]  ;;  %v3169_v40 = vcombine.low %v1331_v52, %v1335_v46 }
 0x303   : > { %4515 = vst [vmem:[#allocation14_spill] sm:$0xff] %v4091_v13  ;;  %v1161_v12 = vadd.f32 %v1160_v2, %v3941_v43  ;;  %v1162_v16 = vpop.f32.mrb[45].mxu0  ;;  %2277 = vmatprep.subr.bf16.mxu1 %v3154_v4  ;;  %2390 = vmatprep.subr.bf16.mxu0 %v4089_v6  ;;  %v3161_v4 = vcombine.low %v1323_v9, %v1327_v42 }
 0x304   : > { %v1163_v57 = vadd.f32 %v1162_v16, %v3945_v44  ;;  %v1164_v63 = vpop.f32.mrb[46].mxu0  ;;  %2119 = vmatprep.mubr.bf16.mxu1 %v4093_v38  ;;  %2232 = vmatprep.mubr.bf16.mxu0 %v4093_v38  ;;  %v3170_v16 = vcombine.high %v1331_v52, %v1335_v46  ;;  %v4120_v42 = vcombine.low %v1332_v37, %v1336_v49 }
 0x305   : > { %v1165_v50 = vadd.f32 %v1164_v63, %v3941_v43  ;;  %v1166_v27 = vpop.f32.mrb[47].mxu0  ;;  %2120 = vmatmul.mubr.bf16.gmra.mrb[40].mxu1 %v4091_v13  ;;  %2233 = vmatmul.mubr.bf16.gmra.mrb[72].mxu0 %v4091_v13  ;;  %v1197_v54 = vmax.f32 %v1161_v12, 0.0  ;;  %v4113_v43 = vcombine.high %v1332_v37, %v1336_v49 }
 0x306   : > { %v1167_v36 = vadd.f32 %v1166_v27, %v3945_v44  ;;  %2278 = vmatpush1.bf16.msra.mxu1 %v3153_v7  ;;  %2391 = vmatpush1.bf16.msra.mxu0 %v4096_v11  ;;  %v1198_v63 = vmax.f32 %v1163_v57, 0.0  ;;  %v1343_v44 = vld [vmem:[#allocation3 + $0x3f0] sm:$0xff]  ;;  %v1340_v7 = vld [vmem:[#allocation3 + $0x3d8] sm:$0xff] }
 0x307   : > { %v1199_v2 = vmax.f32 %v1165_v50, 0.0  ;;  %2279 = vmatprep.subr.bf16.mxu1 %v3162_v28  ;;  %2392 = vmatprep.subr.bf16.mxu0 %v4100_v47  ;;  %v1344_v27 = vld [vmem:[#allocation3 + $0x3f8] sm:$0xff]  ;;  %v3178_v9 = vcombine.high %v1339_v59, %v1343_v44 }
 0x308   : > { %v1200_v6 = vmax.f32 %v1167_v36, 0.0  ;;  %v4125_v56 = vcombine.high %v1340_v7, %v1344_v27  ;;  %v4132_v12 = vcombine.low %v1340_v7, %v1344_v27 }
 0x309   : > { %v4115_v13 = vpack.c.bf16 %v1199_v2, %v1197_v54 }
 0x30a   : > { %v4117_v11 = vpack.c.bf16 %v1200_v6, %v1198_v63  ;;  %2280 = vmatpush1.bf16.msra.mxu1 %v3161_v4  ;;  %2393 = vmatpush1.bf16.msra.mxu0 %v4110_v26  ;;  %v3177_v6 = vcombine.low %v1339_v59, %v1343_v44 }
 0x30b   : > { %2281 = vmatprep.subr.bf16.mxu1 %v3170_v16  ;;  %2394 = vmatprep.subr.bf16.mxu0 %v4113_v43 }
 0x30c   : > { %2129 = vmatprep.mubr.bf16.mxu1 %v4117_v11  ;;  %2242 = vmatprep.mubr.bf16.mxu0 %v4117_v11 }
 0x30d   : > { %2130 = vmatmul.mubr.bf16.gmra.mrb[44].mxu1 %v4115_v13  ;;  %2243 = vmatmul.mubr.bf16.gmra.mrb[76].mxu0 %v4115_v13 }
 0x30e   : > { %2282 = vmatpush1.bf16.msra.mxu1 %v3169_v40  ;;  %2285 = vmatprep.mubr.bf16.mxu1 %v3953_v61 }
 0x30f   : > { %2395 = vmatpush1.bf16.msra.mxu0 %v4120_v42  ;;  %2398 = vmatprep.mubr.bf16.mxu0 %v3953_v61  ;;  %v4520_v61 = vld [vmem:[#allocation15_spill] sm:$0xff] }
 0x310   : > { %2283 = vmatprep.subr.bf16.mxu1 %v3178_v9  ;;  %2396 = vmatprep.subr.bf16.mxu0 %v4125_v56 }
 0x312   : > { %2284 = vmatpush1.bf16.msra.mxu1 %v3177_v6 }
 0x313   : > { %2397 = vmatpush1.bf16.msra.mxu0 %v4132_v12  ;;  %3311 = vmatprep.subr.bf16.mxu1 %v3929_v35  ;;  %v4518_v35 = vld [vmem:[#allocation13_spill] sm:$0xff] }
 0x315   : > { %2286 = vmatmul.mubr.bf16.vlgmr.msra.gmra.mrb[48].mxu1 %v3951_v60 }
 0x316   : > { %3327 = vmatpush1.bf16.msra.mxu1 %v3927_v34  ;;  %2399 = vmatmul.mubr.bf16.vlgmr.msra.gmra.mrb[80].mxu0 %v3951_v60  ;;  %v4517_v34 = vld [vmem:[#allocation12_spill] sm:$0xff]  ;;  %v4519_v60 = vld [vmem:[#allocation14_spill] sm:$0xff] }
 0x317   : > { %2295 = vmatprep.mubr.bf16.mxu1 %v3973_v21  ;;  %2408 = vmatprep.mubr.bf16.mxu0 %v3973_v21  ;;  %v4521_v21 = vld [vmem:[#allocation11_spill] sm:$0xff] }
 0x318   : > { %3312 = vmatprep.subr.bf16.mxu1 %v3956_v39 }
 0x31a   : > { %3328 = vmatpush1.bf16.msra.mxu1 %v3966_v10 }
 0x31b   : > { %3313 = vmatprep.subr.bf16.mxu1 %v3969_v14 }
 0x31d   : > { %2296 = vmatmul.mubr.bf16.gmra.mrb[52].mxu1 %v3971_v20 }
 0x31e   : > { %3329 = vmatpush1.bf16.msra.mxu1 %v3976_v24  ;;  %2409 = vmatmul.mubr.bf16.gmra.mrb[84].mxu0 %v3971_v20  ;;  %v1357_v24 = vsub.s32 2, %v4521_v21 }
 0x31f   : > { %2305 = vmatprep.mubr.bf16.mxu1 %v3997_v33  ;;  %2418 = vmatprep.mubr.bf16.mxu0 %v3997_v33 }
 0x320   : > { %3314 = vmatprep.subr.bf16.mxu1 %v3980_v29  ;;  %v4212_v29 = vld [vmem:[%s4485_s8] sm:$0xff] }
 0x322   : > { %3330 = vmatpush1.bf16.msra.mxu1 %v3990_v51  ;;  %v1361_v51 = vsub.s32 3, %v4521_v21 }
 0x323   : > { %3315 = vmatprep.subr.bf16.mxu1 %v3993_v55 }
 0x325   : > { %2306 = vmatmul.mubr.bf16.gmra.mrb[56].mxu1 %v3995_v62 }
 0x326   : > { %3331 = vmatpush1.bf16.msra.mxu1 %v4000_v1  ;;  %2419 = vmatmul.mubr.bf16.gmra.mrb[88].mxu0 %v3995_v62  ;;  %v4522_v62 = vsub.s32 0, %v4521_v21  ;;  %v4222_v1 = vrot.slane %v4212_v29, %v1357_v24 }
 0x327   : > { %2315 = vmatprep.mubr.bf16.mxu1 %v4021_v45  ;;  %2428 = vmatprep.mubr.bf16.mxu0 %v4021_v45 }
 0x328   : > { %3316 = vmatprep.subr.bf16.mxu1 %v4004_v5  ;;  %v4219_v33 = vrot.slane %v4212_v29, %v4522_v62  ;;  %v4523_v5 = vsub.s32 1, %v4521_v21 }
 0x32a   : > { %3332 = vmatpush1.bf16.msra.mxu1 %v4014_v30  ;;  %v4227_v30 = vrot.slane %v4212_v29, %v4523_v5 }
 0x32b   : > { %3317 = vmatprep.subr.bf16.mxu1 %v4017_v23  ;;  %v4230_v23 = vrot.slane %v4212_v29, %v1361_v51 }
 0x32d   : > { %2316 = vmatmul.mubr.bf16.gmra.mrb[60].mxu1 %v4019_v41 }
 0x32e   : > { %3333 = vmatpush1.bf16.msra.mxu1 %v4024_v48  ;;  %2429 = vmatmul.mubr.bf16.gmra.mrb[92].mxu0 %v4019_v41 }
 0x32f   : > { %2325 = vmatprep.mubr.bf16.mxu1 %v4045_v18  ;;  %2438 = vmatprep.mubr.bf16.mxu0 %v4045_v18 }
 0x330   : > { %3318 = vmatprep.subr.bf16.mxu1 %v4028_v53 }
 0x332   : > { %3334 = vmatpush1.bf16.msra.mxu1 %v4038_v3 }
 0x333   : > { %3319 = vmatprep.subr.bf16.mxu1 %v4041_v8 }
 0x335   : > { %2326 = vmatmul.mubr.bf16.gmra.mrb[64].mxu1 %v4043_v17 }
 0x336   : > { %3335 = vmatpush1.bf16.msra.mxu1 %v4048_v25  ;;  %2439 = vmatmul.mubr.bf16.gmra.mrb[96].mxu0 %v4043_v17 }
 0x337   : > { %2335 = vmatprep.mubr.bf16.mxu1 %v4069_v22  ;;  %2448 = vmatprep.mubr.bf16.mxu0 %v4069_v22 }
 0x338   : > { %3320 = vmatprep.subr.bf16.mxu1 %v4052_v32 }
 0x33a   : > { %3336 = vmatpush1.bf16.msra.mxu1 %v4062_v58 }
 0x33b   : > { %3321 = vmatprep.subr.bf16.mxu1 %v4065_v0 }
 0x33d   : > { %2336 = vmatmul.mubr.bf16.gmra.mrb[68].mxu1 %v4067_v19 }
 0x33e   : > { %3337 = vmatpush1.bf16.msra.mxu1 %v4072_v15  ;;  %2449 = vmatmul.mubr.bf16.gmra.mrb[100].mxu0 %v4067_v19 }
 0x33f   : > { %2345 = vmatprep.mubr.bf16.mxu1 %v4093_v38  ;;  %2458 = vmatprep.mubr.bf16.mxu0 %v4093_v38  ;;  %v908_v38 = vpop.trf.xlu0 }
 0x340   : > { %3322 = vmatprep.subr.bf16.mxu1 %v4076_v31  ;;  %924 = vst [vmem:[%s4201_s19] sm:$0xff] %v908_v38 }
 0x342   : > { %3338 = vmatpush1.bf16.msra.mxu1 %v4517_v34 }
 0x343   : > { %3323 = vmatprep.subr.bf16.mxu1 %v4518_v35  ;;  %v909_v39 = vpop.trf.xlu0 }
 0x344   : > { %925 = vst [vmem:[%s4201_s19 + $0x8] sm:$0xff] %v909_v39 }
 0x345   : > { %2346 = vmatmul.mubr.bf16.gmra.mrb[72].mxu1 %v4519_v60 }
 0x346   : > { %3339 = vmatpush1.bf16.msra.mxu1 %v4520_v61  ;;  %2459 = vmatmul.mubr.bf16.gmra.mrb[104].mxu0 %v4519_v60 }
 0x347   : > { %2355 = vmatprep.mubr.bf16.mxu1 %v4117_v11  ;;  %3324 = vmatprep.subr.bf16.mxu1 %v4100_v47  ;;  %v910_v10 = vpop.trf.xlu0 }
 0x348   : > { %926 = vst [vmem:[%s4201_s19 + $0x10] sm:$0xff] %v910_v10 }
 0x34a   : > { %3340 = vmatpush1.bf16.msra.mxu1 %v4110_v26 }
 0x34b   : > { %3325 = vmatprep.subr.bf16.mxu1 %v4113_v43  ;;  %v911_v14 = vpop.trf.xlu0 }
 0x34c   : > { %927 = vst [vmem:[%s4201_s19 + $0x18] sm:$0xff] %v911_v14 }
 0x34d   : > { %2356 = vmatmul.mubr.bf16.gmra.mrb[76].mxu1 %v4115_v13 }
 0x34e   : > { %3341 = vmatpush1.bf16.msra.mxu1 %v4120_v42  ;;  %2468 = vmatprep.mubr.bf16.mxu1 %v4117_v11 }
 0x34f   : > { %3326 = vmatprep.subr.bf16.mxu1 %v4125_v56  ;;  %v912_v20 = vpop.trf.xlu0 }
 0x350   : > { %928 = vst [vmem:[%s4201_s19 + $0x20] sm:$0xff] %v912_v20 }
 0x352   : > { %3342 = vmatpush1.bf16.msra.mxu1 %v4132_v12 }
 0x353   : > { %v913_v55 = vpop.trf.xlu0 }
 0x354   : > { %929 = vst [vmem:[%s4201_s19 + $0x28] sm:$0xff] %v913_v55 }
 0x355   : > { %2469 = vmatmul.mubr.bf16.vlgmr.msra.gmra.mrb[80].mxu1 %v4115_v13 }
 0x357   : > { %v914_v41 = vpop.trf.xlu0 }
 0x358   : > { %930 = vst [vmem:[%s4201_s19 + $0x30] sm:$0xff] %v914_v41 }
 0x35b   : > { %v915_v13 = vpop.trf.xlu0 }
 0x35c   : > { %931 = vst [vmem:[%s4201_s19 + $0x38] sm:$0xff] %v915_v13 }
 0x35f   : > { %v916_v10 = vpop.trf.xlu0 }
 0x360   : > { %932 = vst [vmem:[%s4201_s19 + $0x40] sm:$0xff] %v916_v10 }
 0x3a8   : > { %v2061_v45 = vpop.f32.mrb[16].mxu1  ;;  %v2174_v48 = vpop.f32.mrb[48].mxu0 }
 0x3a9   : > { %v2062_v53 = vadd.f32 %v2061_v45, %v4219_v33  ;;  %v2175_v3 = vadd.f32 %v2174_v48, %v4222_v1  ;;  %v2063_v8 = vpop.f32.mrb[17].mxu1  ;;  %v2176_v17 = vpop.f32.mrb[49].mxu0 }
 0x3aa   : > { %v2064_v18 = vadd.f32 %v2063_v8, %v4227_v30  ;;  %v2177_v25 = vadd.f32 %v2176_v17, %v4230_v23  ;;  %v2065_v32 = vpop.f32.mrb[18].mxu1  ;;  %v2178_v58 = vpop.f32.mrb[50].mxu0 }
 0x3ab   : > { %v2066_v0 = vadd.f32 %v2065_v32, %v4219_v33  ;;  %v2179_v19 = vadd.f32 %v2178_v58, %v4222_v1  ;;  %v2067_v22 = vpop.f32.mrb[19].mxu1  ;;  %v2180_v15 = vpop.f32.mrb[51].mxu0  ;;  %v2479_v11 = vmax.f32 %v2062_v53, 0.0  ;;  %v2481_v28 = vmax.f32 %v2175_v3, 0.0 }
 0x3ac   : > { %v2068_v31 = vadd.f32 %v2067_v22, %v4227_v30  ;;  %v2181_v59 = vadd.f32 %v2180_v15, %v4230_v23  ;;  %v2480_v57 = vmax.f32 %v2064_v18, 0.0  ;;  %v2482_v46 = vmax.f32 %v2177_v25, 0.0 }
 0x3ad   : > { %v2487_v47 = vmax.f32 %v2066_v0, 0.0  ;;  %v2489_v52 = vmax.f32 %v2179_v19, 0.0 }
 0x3ae   : > { %v2488_v37 = vmax.f32 %v2068_v31, 0.0  ;;  %v2490_v49 = vmax.f32 %v2181_v59, 0.0 }
 0x3af   : > { %v2613_v50 = vmax.f32 %v2479_v11, %v2487_v47  ;;  %v2655_v36 = vmax.f32 %v2481_v28, %v2489_v52 }
 0x3b0   : > { %v2634_v4 = vmax.f32 %v2480_v57, %v2488_v37  ;;  %v2676_v26 = vmax.f32 %v2482_v46, %v2490_v49  ;;  %v2071_v54 = vpop.f32.mrb[20].mxu1  ;;  %v2184_v2 = vpop.f32.mrb[52].mxu0 }
 0x3b1   : > { %v2072_v16 = vadd.f32 %v2071_v54, %v4219_v33  ;;  %v2185_v43 = vadd.f32 %v2184_v2, %v4222_v1  ;;  %v2073_v63 = vpop.f32.mrb[21].mxu1  ;;  %v2186_v44 = vpop.f32.mrb[53].mxu0 }
 0x3b2   : > { %v2074_v7 = vadd.f32 %v2073_v63, %v4227_v30  ;;  %v2187_v27 = vadd.f32 %v2186_v44, %v4230_v23  ;;  %v2075_v40 = vpop.f32.mrb[22].mxu1  ;;  %v2188_v42 = vpop.f32.mrb[54].mxu0 }
 0x3b3   : > { %v2495_v9 = vmax.f32 %v2072_v16, 0.0  ;;  %v2497_v56 = vmax.f32 %v2185_v43, 0.0  ;;  %v2076_v6 = vadd.f32 %v2075_v40, %v4219_v33  ;;  %v2189_v12 = vadd.f32 %v2188_v42, %v4222_v1  ;;  %v2077_v34 = vpop.f32.mrb[23].mxu1  ;;  %v2190_v35 = vpop.f32.mrb[55].mxu0 }
 0x3b4   : > { %v2496_v60 = vmax.f32 %v2074_v7, 0.0  ;;  %v2498_v61 = vmax.f32 %v2187_v27, 0.0  ;;  %v2078_v38 = vadd.f32 %v2077_v34, %v4227_v30  ;;  %v2191_v39 = vadd.f32 %v2190_v35, %v4230_v23  ;;  %v917_v49 = vpop.trf.xlu0 }
 0x3b5   : > { %v2614_v14 = vmax.f32 %v2613_v50, %v2495_v9  ;;  %v2656_v20 = vmax.f32 %v2655_v36, %v2497_v56  ;;  %v2503_v24 = vmax.f32 %v2076_v6, 0.0  ;;  %v2505_v51 = vmax.f32 %v2189_v12, 0.0  ;;  %933 = vst [vmem:[%s4201_s19 + $0x48] sm:$0xff] %v917_v49 }
 0x3b6   : > { %v2635_v55 = vmax.f32 %v2634_v4, %v2496_v60  ;;  %v2677_v62 = vmax.f32 %v2676_v26, %v2498_v61  ;;  %v2504_v5 = vmax.f32 %v2078_v38, 0.0  ;;  %v2506_v41 = vmax.f32 %v2191_v39, 0.0 }
 0x3b7   : > { %v2615_v45 = vmax.f32 %v2614_v14, %v2503_v24  ;;  %v2657_v48 = vmax.f32 %v2656_v20, %v2505_v51 }
 0x3b8   : > { %v2636_v53 = vmax.f32 %v2635_v55, %v2504_v5  ;;  %v2678_v3 = vmax.f32 %v2677_v62, %v2506_v41  ;;  %v2081_v8 = vpop.f32.mrb[24].mxu1  ;;  %v2194_v17 = vpop.f32.mrb[56].mxu0 }
 0x3b9   : > { %v2082_v18 = vadd.f32 %v2081_v8, %v4219_v33  ;;  %v2195_v25 = vadd.f32 %v2194_v17, %v4222_v1  ;;  %v2083_v32 = vpop.f32.mrb[25].mxu1  ;;  %v2196_v58 = vpop.f32.mrb[57].mxu0 }
 0x3ba   : > { %v2084_v0 = vadd.f32 %v2083_v32, %v4227_v30  ;;  %v2197_v19 = vadd.f32 %v2196_v58, %v4230_v23  ;;  %v2085_v22 = vpop.f32.mrb[26].mxu1  ;;  %v2198_v15 = vpop.f32.mrb[58].mxu0 }
 0x3bb   : > { %v2511_v31 = vmax.f32 %v2082_v18, 0.0  ;;  %v2513_v59 = vmax.f32 %v2195_v25, 0.0  ;;  %v2086_v13 = vadd.f32 %v2085_v22, %v4219_v33  ;;  %v2199_v11 = vadd.f32 %v2198_v15, %v4222_v1  ;;  %v2087_v28 = vpop.f32.mrb[27].mxu1  ;;  %v2200_v47 = vpop.f32.mrb[59].mxu0 }
 0x3bc   : > { %v2512_v52 = vmax.f32 %v2084_v0, 0.0  ;;  %v2514_v57 = vmax.f32 %v2197_v19, 0.0  ;;  %v2088_v46 = vadd.f32 %v2087_v28, %v4227_v30  ;;  %v2201_v37 = vadd.f32 %v2200_v47, %v4230_v23  ;;  %v918_v41 = vpop.trf.xlu0 }
 0x3bd   : > { %v2616_v50 = vmax.f32 %v2615_v45, %v2511_v31  ;;  %v2658_v36 = vmax.f32 %v2657_v48, %v2513_v59  ;;  %v2519_v4 = vmax.f32 %v2086_v13, 0.0  ;;  %v2521_v26 = vmax.f32 %v2199_v11, 0.0  ;;  %934 = vst [vmem:[%s4201_s19 + $0x50] sm:$0xff] %v918_v41 }
 0x3be   : > { %v2637_v54 = vmax.f32 %v2636_v53, %v2512_v52  ;;  %v2679_v2 = vmax.f32 %v2678_v3, %v2514_v57  ;;  %v2520_v16 = vmax.f32 %v2088_v46, 0.0  ;;  %v2522_v43 = vmax.f32 %v2201_v37, 0.0 }
 0x3bf   : > { %v2617_v63 = vmax.f32 %v2616_v50, %v2519_v4  ;;  %v2659_v44 = vmax.f32 %v2658_v36, %v2521_v26 }
 0x3c0   : > { %v2638_v7 = vmax.f32 %v2637_v54, %v2520_v16  ;;  %v2680_v27 = vmax.f32 %v2679_v2, %v2522_v43  ;;  %v2091_v40 = vpop.f32.mrb[28].mxu1  ;;  %v2204_v42 = vpop.f32.mrb[60].mxu0 }
 0x3c1   : > { %v2092_v9 = vadd.f32 %v2091_v40, %v4219_v33  ;;  %v2205_v56 = vadd.f32 %v2204_v42, %v4222_v1  ;;  %v2093_v6 = vpop.f32.mrb[29].mxu1  ;;  %v2206_v12 = vpop.f32.mrb[61].mxu0 }
 0x3c2   : > { %v2094_v34 = vadd.f32 %v2093_v6, %v4227_v30  ;;  %v2207_v35 = vadd.f32 %v2206_v12, %v4230_v23  ;;  %v2095_v60 = vpop.f32.mrb[30].mxu1  ;;  %v2208_v61 = vpop.f32.mrb[62].mxu0 }
 0x3c3   : > { %v2527_v38 = vmax.f32 %v2092_v9, 0.0  ;;  %v2529_v39 = vmax.f32 %v2205_v56, 0.0  ;;  %v2096_v10 = vadd.f32 %v2095_v60, %v4219_v33  ;;  %v2209_v14 = vadd.f32 %v2208_v61, %v4222_v1  ;;  %v2097_v20 = vpop.f32.mrb[31].mxu1  ;;  %v2210_v24 = vpop.f32.mrb[63].mxu0 }
 0x3c4   : > { %v2528_v51 = vmax.f32 %v2094_v34, 0.0  ;;  %v2530_v55 = vmax.f32 %v2207_v35, 0.0  ;;  %v2098_v62 = vadd.f32 %v2097_v20, %v4227_v30  ;;  %v2211_v5 = vadd.f32 %v2210_v24, %v4230_v23  ;;  %v919_v43 = vpop.trf.xlu0 }
 0x3c5   : > { %v2618_v45 = vmax.f32 %v2617_v63, %v2527_v38  ;;  %v2660_v48 = vmax.f32 %v2659_v44, %v2529_v39  ;;  %v2535_v53 = vmax.f32 %v2096_v10, 0.0  ;;  %v2537_v3 = vmax.f32 %v2209_v14, 0.0  ;;  %935 = vst [vmem:[%s4201_s19 + $0x58] sm:$0xff] %v919_v43 }
 0x3c6   : > { %v2639_v8 = vmax.f32 %v2638_v7, %v2528_v51  ;;  %v2681_v17 = vmax.f32 %v2680_v27, %v2530_v55  ;;  %v2536_v18 = vmax.f32 %v2098_v62, 0.0  ;;  %v2538_v25 = vmax.f32 %v2211_v5, 0.0 }
 0x3c7   : > { %v2619_v32 = vmax.f32 %v2618_v45, %v2535_v53  ;;  %v2661_v58 = vmax.f32 %v2660_v48, %v2537_v3  ;;  %v3555_v43 = vmov 1966171168  }
 0x3c8   : > { %v2640_v0 = vmax.f32 %v2639_v8, %v2536_v18  ;;  %v2682_v19 = vmax.f32 %v2681_v17, %v2538_v25  ;;  %v2101_v22 = vpop.f32.mrb[32].mxu1  ;;  %v2214_v15 = vpop.f32.mrb[64].mxu0 }
 0x3c9   : > { %v2102_v31 = vadd.f32 %v2101_v22, %v4219_v33  ;;  %v2215_v59 = vadd.f32 %v2214_v15, %v4222_v1  ;;  %v2103_v13 = vpop.f32.mrb[33].mxu1  ;;  %v2216_v11 = vpop.f32.mrb[65].mxu0 }
 0x3ca   : > { %v2104_v28 = vadd.f32 %v2103_v13, %v4227_v30  ;;  %v2217_v47 = vadd.f32 %v2216_v11, %v4230_v23  ;;  %v2105_v52 = vpop.f32.mrb[34].mxu1  ;;  %v2218_v57 = vpop.f32.mrb[66].mxu0 }
 0x3cb   : > { %v2543_v46 = vmax.f32 %v2102_v31, 0.0  ;;  %v2545_v37 = vmax.f32 %v2215_v59, 0.0  ;;  %v2106_v49 = vadd.f32 %v2105_v52, %v4219_v33  ;;  %v2219_v50 = vadd.f32 %v2218_v57, %v4222_v1  ;;  %v2107_v36 = vpop.f32.mrb[35].mxu1  ;;  %v2220_v4 = vpop.f32.mrb[67].mxu0 }
 0x3cc   : > { %v2544_v26 = vmax.f32 %v2104_v28, 0.0  ;;  %v2546_v54 = vmax.f32 %v2217_v47, 0.0  ;;  %v2108_v2 = vadd.f32 %v2107_v36, %v4227_v30  ;;  %v2221_v16 = vadd.f32 %v2220_v4, %v4230_v23  ;;  %v920_v25 = vpop.trf.xlu0 }
 0x3cd   : > { %v2620_v63 = vmax.f32 %v2619_v32, %v2543_v46  ;;  %v2662_v44 = vmax.f32 %v2661_v58, %v2545_v37  ;;  %v2551_v7 = vmax.f32 %v2106_v49, 0.0  ;;  %v2553_v27 = vmax.f32 %v2219_v50, 0.0  ;;  %936 = vst [vmem:[%s4201_s19 + $0x60] sm:$0xff] %v920_v25 }
 0x3ce   : > { %v2641_v40 = vmax.f32 %v2640_v0, %v2544_v26  ;;  %v2683_v42 = vmax.f32 %v2682_v19, %v2546_v54  ;;  %v2552_v9 = vmax.f32 %v2108_v2, 0.0  ;;  %v2554_v56 = vmax.f32 %v2221_v16, 0.0 }
 0x3cf   : > { %v2621_v6 = vmax.f32 %v2620_v63, %v2551_v7  ;;  %v2663_v12 = vmax.f32 %v2662_v44, %v2553_v27  ;;  %v1365_v36 = vsub.s32 4, %v4521_v21  ;;  %v1373_v4 = vsub.s32 6, %v4521_v21 }
 0x3d0   : > { %v2642_v34 = vmax.f32 %v2641_v40, %v2552_v9  ;;  %v2684_v35 = vmax.f32 %v2683_v42, %v2554_v56  ;;  %v2111_v60 = vpop.f32.mrb[36].mxu1  ;;  %v2224_v61 = vpop.f32.mrb[68].mxu0  ;;  %v4293_v63 = vunpack.c.l.s4 %v3555_v43  ;;  %v1369_v44 = vsub.s32 5, %v4521_v21 }
 0x3d1   : > { %v2112_v38 = vadd.f32 %v2111_v60, %v4219_v33  ;;  %v2225_v39 = vadd.f32 %v2224_v61, %v4222_v1  ;;  %v2113_v10 = vpop.f32.mrb[37].mxu1  ;;  %v2226_v14 = vpop.f32.mrb[69].mxu0  ;;  %v4305_v25 = vrot.slane %v4212_v29, %v1365_v36 }
 0x3d2   : > { %v2114_v20 = vadd.f32 %v2113_v10, %v4227_v30  ;;  %v2227_v24 = vadd.f32 %v2226_v14, %v4230_v23  ;;  %v2115_v51 = vpop.f32.mrb[38].mxu1  ;;  %v2228_v55 = vpop.f32.mrb[70].mxu0 }
 0x3d3   : > { %v2559_v62 = vmax.f32 %v2112_v38, 0.0  ;;  %v2561_v5 = vmax.f32 %v2225_v39, 0.0  ;;  %v2116_v41 = vadd.f32 %v2115_v51, %v4219_v33  ;;  %v2229_v45 = vadd.f32 %v2228_v55, %v4222_v1  ;;  %v2117_v48 = vpop.f32.mrb[39].mxu1  ;;  %v2230_v53 = vpop.f32.mrb[71].mxu0 }
 0x3d4   : > { %v2560_v3 = vmax.f32 %v2114_v20, 0.0  ;;  %v2562_v8 = vmax.f32 %v2227_v24, 0.0  ;;  %v2118_v17 = vadd.f32 %v2117_v48, %v4227_v30  ;;  %v2231_v18 = vadd.f32 %v2230_v53, %v4230_v23  ;;  %v921_v60 = vpop.trf.xlu0 }
 0x3d5   : > { %v2622_v32 = vmax.f32 %v2621_v6, %v2559_v62  ;;  %v2664_v58 = vmax.f32 %v2663_v12, %v2561_v5  ;;  %v2567_v0 = vmax.f32 %v2116_v41, 0.0  ;;  %v2569_v19 = vmax.f32 %v2229_v45, 0.0  ;;  %937 = vst [vmem:[%s4201_s19 + $0x68] sm:$0xff] %v921_v60 }
 0x3d6   : > { %v2643_v22 = vmax.f32 %v2642_v34, %v2560_v3  ;;  %v2685_v15 = vmax.f32 %v2684_v35, %v2562_v8  ;;  %v2568_v31 = vmax.f32 %v2118_v17, 0.0  ;;  %v2570_v59 = vmax.f32 %v2231_v18, 0.0 }
 0x3d7   : > { %v2623_v13 = vmax.f32 %v2622_v32, %v2567_v0  ;;  %v2665_v11 = vmax.f32 %v2664_v58, %v2569_v19  ;;  %v1377_v53 = vsub.s32 7, %v4521_v21  ;;  %v4308_v32 = vrot.slane %v4212_v29, %v1373_v4 }
 0x3d8   : > { %v2644_v28 = vmax.f32 %v2643_v22, %v2568_v31  ;;  %v2686_v47 = vmax.f32 %v2685_v15, %v2570_v59  ;;  %v2121_v52 = vpop.f32.mrb[40].mxu1  ;;  %v2234_v57 = vpop.f32.mrb[72].mxu0  ;;  %v2795_v15 = vunpack.c.0.s8 %v4293_v63  ;;  %v4314_v31 = vrot.slane %v4212_v29, %v1369_v44 }
 0x3d9   : > { %v2122_v46 = vadd.f32 %v2121_v52, %v4219_v33  ;;  %v2235_v37 = vadd.f32 %v2234_v57, %v4222_v1  ;;  %v2123_v49 = vpop.f32.mrb[41].mxu1  ;;  %v2236_v50 = vpop.f32.mrb[73].mxu0  ;;  %v4331_v43 = vrot.slane %v4212_v29, %v1377_v53 }
 0x3da   : > { %v2124_v26 = vadd.f32 %v2123_v49, %v4227_v30  ;;  %v2237_v54 = vadd.f32 %v2236_v50, %v4230_v23  ;;  %v2125_v2 = vpop.f32.mrb[42].mxu1  ;;  %v2238_v16 = vpop.f32.mrb[74].mxu0 }
 0x3db   : > { %v2575_v7 = vmax.f32 %v2122_v46, 0.0  ;;  %v2577_v27 = vmax.f32 %v2235_v37, 0.0  ;;  %v2126_v40 = vadd.f32 %v2125_v2, %v4219_v33  ;;  %v2239_v42 = vadd.f32 %v2238_v16, %v4222_v1  ;;  %v2127_v9 = vpop.f32.mrb[43].mxu1  ;;  %v2240_v56 = vpop.f32.mrb[75].mxu0 }
 0x3dc   : > { %v2576_v6 = vmax.f32 %v2124_v26, 0.0  ;;  %v2578_v12 = vmax.f32 %v2237_v54, 0.0  ;;  %v2128_v34 = vadd.f32 %v2127_v9, %v4227_v30  ;;  %v2241_v35 = vadd.f32 %v2240_v56, %v4230_v23  ;;  %v922_v50 = vpop.trf.xlu0 }
 0x3dd   : > { %v2624_v61 = vmax.f32 %v2623_v13, %v2575_v7  ;;  %v2666_v38 = vmax.f32 %v2665_v11, %v2577_v27  ;;  %v2583_v39 = vmax.f32 %v2126_v40, 0.0  ;;  %v2585_v10 = vmax.f32 %v2239_v42, 0.0  ;;  %938 = vst [vmem:[%s4201_s19 + $0x70] sm:$0xff] %v922_v50 }
 0x3de   : > { %v2645_v14 = vmax.f32 %v2644_v28, %v2576_v6  ;;  %v2687_v20 = vmax.f32 %v2686_v47, %v2578_v12  ;;  %v2584_v24 = vmax.f32 %v2128_v34, 0.0  ;;  %v2586_v51 = vmax.f32 %v2241_v35, 0.0 }
 0x3df   : > { %v2625_v55 = vmax.f32 %v2624_v61, %v2583_v39  ;;  %v2667_v62 = vmax.f32 %v2666_v38, %v2585_v10  ;;  %v4334_v9 = vsub.s32 %v2795_v15, %v4521_v21 }
 0x3e0   : > { %v2646_v5 = vmax.f32 %v2645_v14, %v2584_v24  ;;  %v2688_v41 = vmax.f32 %v2687_v20, %v2586_v51  ;;  %v2131_v45 = vpop.f32.mrb[44].mxu1  ;;  %v2244_v48 = vpop.f32.mrb[76].mxu0 }
 0x3e1   : > { %v2132_v3 = vadd.f32 %v2131_v45, %v4219_v33  ;;  %v2245_v8 = vadd.f32 %v2244_v48, %v4222_v1  ;;  %v2133_v17 = vpop.f32.mrb[45].mxu1  ;;  %v2246_v18 = vpop.f32.mrb[77].mxu0 }
 0x3e2   : > { %v2134_v58 = vadd.f32 %v2133_v17, %v4227_v30  ;;  %v2247_v0 = vadd.f32 %v2246_v18, %v4230_v23  ;;  %v2135_v19 = vpop.f32.mrb[46].mxu1  ;;  %v2248_v22 = vpop.f32.mrb[78].mxu0 }
 0x3e3   : > { %v2591_v59 = vmax.f32 %v2132_v3, 0.0  ;;  %v2593_v13 = vmax.f32 %v2245_v8, 0.0  ;;  %v2136_v11 = vadd.f32 %v2135_v19, %v4219_v33  ;;  %v2249_v28 = vadd.f32 %v2248_v22, %v4222_v1  ;;  %v2137_v47 = vpop.f32.mrb[47].mxu1  ;;  %v2250_v52 = vpop.f32.mrb[79].mxu0 }
 0x3e4   : > { %v2592_v57 = vmax.f32 %v2134_v58, 0.0  ;;  %v2594_v46 = vmax.f32 %v2247_v0, 0.0  ;;  %v2138_v37 = vadd.f32 %v2137_v47, %v4227_v30  ;;  %v2251_v49 = vadd.f32 %v2250_v52, %v4230_v23  ;;  %v923_v27 = vpop.trf.xlu0 }
 0x3e5   : > { %v2626_v36 = vmax.f32 %v2625_v55, %v2591_v59  ;;  %v2668_v4 = vmax.f32 %v2667_v62, %v2593_v13  ;;  %v2599_v26 = vmax.f32 %v2136_v11, 0.0  ;;  %v2601_v54 = vmax.f32 %v2249_v28, 0.0  ;;  %939 = vst [vmem:[%s4201_s19 + $0x78] sm:$0xff] %v923_v27  ;;  %s3471_s19 = sshll.u32 %s3556_s20, 4  ;;  %s3472_s19 = int_to_ptr.vmem [resolvable:$false] %s3471_s19 }
 0x3e6   : > { %v2647_v2 = vmax.f32 %v2646_v5, %v2592_v57  ;;  %v2689_v33 = vmax.f32 %v2688_v41, %v2594_v46  ;;  %v2600_v16 = vmax.f32 %v2138_v37, 0.0  ;;  %v2602_v1 = vmax.f32 %v2251_v49, 0.0  ;;  %s3473_s24 = scalar_lea.vmem %s3472_s19, 4096  ;;  %p3474_p1 = scmp.lt.s32.totalorder %s4328_s22, %s3472_s19 }
 0x3e7   : > { %v2627_v30 = vmax.f32 %v2626_v36, %v2599_v26  ;;  %v2669_v23 = vmax.f32 %v2668_v4, %v2601_v54  ;;  %p3475_p3 = scmp.lt.s32.totalorder %s3473_s24, %s3467_s29 }
 0x3e8   : > { %v2648_v63 = vmax.f32 %v2647_v2, %v2600_v16  ;;  %v2690_v44 = vmax.f32 %v2689_v33, %v2602_v1  ;;  %v2287_v7 = vpop.f32.mrb[48].mxu1 }
 0x3e9   : > { %v2628_v40 = vrot.slane %v2627_v30, 4  ;;  %v2670_v42 = vrot.slane %v2669_v23, 4  ;;  %v4337_v56 = vadd.f32 %v2287_v7, %v4305_v25  ;;  %v2400_v6 = vpop.f32.mrb[80].mxu0  ;;  %v2289_v12 = vpop.f32.mrb[49].mxu1  ;;  %p3476_p5 = por %p3475_p3, %p3474_p1 }
 0x3ea   : > { %v2649_v29 = vrot.slane %v2648_v63, 4  ;;  %v2691_v34 = vrot.slane %v2690_v44, 4  ;;  %v4341_v35 = vadd.f32 %v2400_v6, %v4308_v32  ;;  %v4344_v60 = vadd.f32 %v2289_v12, %v4314_v31  ;;  %v2402_v61 = vpop.f32.mrb[81].mxu0  ;;  %v2291_v38 = vpop.f32.mrb[50].mxu1 }
 0x3eb   : > { %p3477_p6 = pnand %p3476_p5, %p3470_p13 }
 0x3ed   : > { %3480 = shalt.err (!%p3477_p6)
}
 0x3ee   : > { %s3481_s12 = scalar_lea.hbm %s4326_s16, 2048  ;;  %s3485_s27 = scalar_lea.hbm %s4486_s9, 4096 }
 0x3ef   : > { %p3482_p7 = scmp.ne.s32.totalorder %s4326_s16, %s3481_s12  ;;  %p3486_p0 = scmp.lt.u32.totalorder %s4326_s16, %s4486_s9 }
 0x3f0   : > { %p3487_p2 = scmp.lt.u32.totalorder %s3485_s27, %s3481_s12  ;;  %p3489_p8 = scmp.lt.u32.totalorder %s3481_s12, %s4326_s16 }
 0x3f1   : > { %p3483_p9 = pnand %p3482_p7, %p4524_p10 }
 0x3f2   : > { %p3488_p4 = por %p3487_p2, %p3486_p0 }
 0x3f3   : > { %p3484_p12 = pneg %p3483_p9 }
 0x3f4   : > { %p3490_p11 = por %p3489_p8, %p3488_p4 }
 0x3f6   : > { %p3491_p13 = pnand %p3490_p11, %p3484_p12 }
 0x3f8   : > { %3494 = shalt.err (!%p3491_p13)
}
 0x3f9   : > { %s3557_s29 = smov 128   ;;  %s3558_s19 = smov 8   ;;  %v2629_v21 = vmax.f32 %v2627_v30, %v2628_v40  ;;  %v2671_v39 = vmax.f32 %v2669_v23, %v2670_v42  ;;  %v2483_v10 = vmax.f32 %v4337_v56, 0.0  ;;  %v2403_v14 = vadd.f32 %v2402_v61, %v4331_v43  ;;  %v2404_v20 = vpop.f32.mrb[82].mxu0  ;;  %v2293_v24 = vpop.f32.mrb[51].mxu1 }
 0x3fa   : > { %3347 = dma.vmem_to_hbm [thread:$0]  (%p4524_p10), %s4328_s22, 2048, %s4326_s16, %s4348_s30, %s3557_s29, %s3557_s29, %s3558_s19   ;;  %v2650_v51 = vmax.f32 %v2648_v63, %v2649_v29  ;;  %v2692_v55 = vmax.f32 %v2690_v44, %v2691_v34  ;;  %v2485_v62 = vmax.f32 %v4341_v35, 0.0  ;;  %v2484_v5 = vmax.f32 %v4344_v60, 0.0  ;;  %v2406_v41 = vpop.f32.mrb[83].mxu0  ;;  %v2297_v47 = vpop.f32.mrb[52].mxu1 }
 0x3fb   : > { %v2630_v45 = vrot.slane %v2629_v21, 2  ;;  %v2672_v48 = vrot.slane %v2671_v39, 2  ;;  %v2486_v53 = vmax.f32 %v2403_v14, 0.0  ;;  %v2292_v3 = vadd.f32 %v2291_v38, %v4305_v25  ;;  %v2410_v49 = vpop.f32.mrb[84].mxu0  ;;  %v2299_v50 = vpop.f32.mrb[53].mxu1  ;;  %s3001_s23 = sshll.u32 %s3709_s17, 3 }
 0x3fc   : > { %v2651_v8 = vrot.slane %v2650_v51, 2  ;;  %v2693_v17 = vrot.slane %v2692_v55, 2  ;;  %v2405_v18 = vadd.f32 %v2404_v20, %v4308_v32  ;;  %v2294_v58 = vadd.f32 %v2293_v24, %v4314_v31  ;;  %v2412_v2 = vpop.f32.mrb[85].mxu0  ;;  %v2301_v33 = vpop.f32.mrb[54].mxu1  ;;  %s427_s30 = scalar_lea.vmem %s4487_s10, %s3001_s23 }
 0x3fd   : > { %v2631_v0 = vmax.f32 %v2629_v21, %v2630_v45  ;;  %v2673_v19 = vmax.f32 %v2671_v39, %v2672_v48  ;;  %v2491_v22 = vmax.f32 %v2292_v3, 0.0  ;;  %v2407_v15 = vadd.f32 %v2406_v41, %v4331_v43  ;;  %v2414_v63 = vpop.f32.mrb[86].mxu0  ;;  %v2303_v44 = vpop.f32.mrb[55].mxu1 }
 0x3fe   : > { %v2652_v59 = vmax.f32 %v2650_v51, %v2651_v8  ;;  %v2694_v13 = vmax.f32 %v2692_v55, %v2693_v17  ;;  %v2493_v11 = vmax.f32 %v2405_v18, 0.0  ;;  %v2492_v28 = vmax.f32 %v2294_v58, 0.0  ;;  %v2416_v56 = vpop.f32.mrb[87].mxu0 }
 0x3ff   : > { %v2632_v52 = vrot.slane %v2631_v0, 1  ;;  %v2674_v57 = vrot.slane %v2673_v19, 1  ;;  %v2697_v46 = vmax.f32 %v2483_v10, %v2491_v22  ;;  %v2494_v37 = vmax.f32 %v2407_v15, 0.0 }
 0x400   : > { %v2653_v36 = vrot.slane %v2652_v59, 1  ;;  %v2695_v4 = vrot.slane %v2694_v13, 1  ;;  %v2739_v26 = vmax.f32 %v2485_v62, %v2493_v11  ;;  %v2718_v54 = vmax.f32 %v2484_v5, %v2492_v28  ;;  %v2307_v62 = vpop.f32.mrb[56].mxu1 }
 0x401   : > { %v2633_v16 = vmax.f32 %v2631_v0, %v2632_v52  ;;  %v2675_v1 = vmax.f32 %v2673_v19, %v2674_v57  ;;  %v2760_v30 = vmax.f32 %v2486_v53, %v2494_v37  ;;  %v2298_v23 = vadd.f32 %v2297_v47, %v4305_v25  ;;  %v2420_v53 = vpop.f32.mrb[88].mxu0  ;;  %v2309_v3 = vpop.f32.mrb[57].mxu1 }
 0x402   : > { %v2654_v7 = vmax.f32 %v2652_v59, %v2653_v36  ;;  %v2696_v27 = vmax.f32 %v2694_v13, %v2695_v4  ;;  %v2411_v40 = vadd.f32 %v2410_v49, %v4308_v32  ;;  %v2300_v42 = vadd.f32 %v2299_v50, %v4314_v31  ;;  %v2422_v0 = vpop.f32.mrb[89].mxu0  ;;  %v2311_v19 = vpop.f32.mrb[58].mxu1 }
 0x403   : > { %v2499_v6 = vmax.f32 %v2298_v23, 0.0  ;;  %v2413_v12 = vadd.f32 %v2412_v2, %v4331_v43  ;;  %v2302_v29 = vadd.f32 %v2301_v33, %v4305_v25  ;;  %v2415_v34 = vadd.f32 %v2414_v63, %v4308_v32  ;;  %v2424_v11 = vpop.f32.mrb[90].mxu0  ;;  %v2313_v28 = vpop.f32.mrb[59].mxu1 }
 0x404   : > { %v2789_v35 = vcombine.low %v2633_v16, %v2654_v7  ;;  %v2790_v60 = vcombine.low %v2675_v1, %v2696_v27  ;;  %v2501_v61 = vmax.f32 %v2411_v40, 0.0  ;;  %v2500_v38 = vmax.f32 %v2300_v42, 0.0 }
 0x405   : > { %v2698_v21 = vmax.f32 %v2697_v46, %v2499_v6  ;;  %v2502_v39 = vmax.f32 %v2413_v12, 0.0  ;;  %v2507_v10 = vmax.f32 %v2302_v29, 0.0  ;;  %v2509_v14 = vmax.f32 %v2415_v34, 0.0  ;;  %v2426_v46 = vpop.f32.mrb[91].mxu0 }
 0x406   : > { %v4387_v20 = vrot.slane %v2789_v35, %v4334_v9  ;;  %v4390_v24 = vrot.slane %v2790_v60, %v4334_v9  ;;  %v2740_v51 = vmax.f32 %v2739_v26, %v2501_v61  ;;  %v2719_v55 = vmax.f32 %v2718_v54, %v2500_v38  ;;  %v2430_v42 = vpop.f32.mrb[92].mxu0 }
 0x407   : > { %v2761_v5 = vmax.f32 %v2760_v30, %v2502_v39  ;;  %v2699_v41 = vmax.f32 %v2698_v21, %v2507_v10  ;;  %v2304_v45 = vadd.f32 %v2303_v44, %v4314_v31  ;;  %v2417_v48 = vadd.f32 %v2416_v56, %v4331_v43  ;;  %v2317_v44 = vpop.f32.mrb[60].mxu1  ;;  %v2432_v34 = vpop.f32.mrb[93].mxu0 }
 0x408   : > { %v2821_v8 = vcombine.low %v4387_v20, %v4390_v24  ;;  %v2741_v17 = vmax.f32 %v2740_v51, %v2509_v14  ;;  %v2308_v18 = vadd.f32 %v2307_v62, %v4305_v25  ;;  %v2421_v58 = vadd.f32 %v2420_v53, %v4308_v32  ;;  %v2319_v56 = vpop.f32.mrb[61].mxu1  ;;  %v2434_v39 = vpop.f32.mrb[94].mxu0 }
 0x409   : > { %v2508_v22 = vmax.f32 %v2304_v45, 0.0  ;;  %v2510_v15 = vmax.f32 %v2417_v48, 0.0  ;;  %v2310_v59 = vadd.f32 %v2309_v3, %v4314_v31  ;;  %v2423_v13 = vadd.f32 %v2422_v0, %v4331_v43  ;;  %v2321_v35 = vpop.f32.mrb[62].mxu1 }
 0x40a   : > { %v2515_v47 = vmax.f32 %v2308_v18, 0.0  ;;  %v2517_v52 = vmax.f32 %v2421_v58, 0.0  ;;  %v2312_v57 = vadd.f32 %v2311_v19, %v4305_v25  ;;  %v2425_v2 = vadd.f32 %v2424_v11, %v4308_v32  ;;  %v2323_v10 = vpop.f32.mrb[63].mxu1 }
 0x40b   : > { %v2720_v37 = vmax.f32 %v2719_v55, %v2508_v22  ;;  %v2762_v49 = vmax.f32 %v2761_v5, %v2510_v15  ;;  %v2516_v50 = vmax.f32 %v2310_v59, 0.0  ;;  %v2518_v36 = vmax.f32 %v2423_v13, 0.0  ;;  %v2436_v5 = vpop.f32.mrb[95].mxu0  ;;  %v2327_v13 = vpop.f32.mrb[64].mxu1 }
 0x40c   : > { %v2700_v4 = vmax.f32 %v2699_v41, %v2515_v47  ;;  %v2742_v26 = vmax.f32 %v2741_v17, %v2517_v52  ;;  %v2523_v54 = vmax.f32 %v2312_v57, 0.0  ;;  %v2314_v1 = vadd.f32 %v2313_v28, %v4314_v31  ;;  %v2440_v52 = vpop.f32.mrb[96].mxu0  ;;  %v2329_v57 = vpop.f32.mrb[65].mxu1 }
 0x40d   : > { %v2721_v33 = vmax.f32 %v2720_v37, %v2516_v50  ;;  %v2763_v16 = vmax.f32 %v2762_v49, %v2518_v36  ;;  %v2427_v30 = vadd.f32 %v2426_v46, %v4331_v43  ;;  %v2525_v63 = vmax.f32 %v2425_v2, 0.0  ;;  %v2442_v49 = vpop.f32.mrb[97].mxu0  ;;  %v2331_v50 = vpop.f32.mrb[66].mxu1 }
 0x40e   : > { %v2701_v23 = vmax.f32 %v2700_v4, %v2523_v54  ;;  %v2524_v7 = vmax.f32 %v2314_v1, 0.0  ;;  %v2318_v40 = vadd.f32 %v2317_v44, %v4305_v25  ;;  %v2431_v12 = vadd.f32 %v2430_v42, %v4308_v32  ;;  %v2444_v54 = vpop.f32.mrb[98].mxu0  ;;  %v2333_v2 = vpop.f32.mrb[67].mxu1 }
 0x40f   : > { %v2526_v27 = vmax.f32 %v2427_v30, 0.0  ;;  %v2743_v6 = vmax.f32 %v2742_v26, %v2525_v63  ;;  %v2320_v29 = vadd.f32 %v2319_v56, %v4314_v31  ;;  %v2433_v21 = vadd.f32 %v2432_v34, %v4331_v43 }
 0x410   : > { %v2722_v60 = vmax.f32 %v2721_v33, %v2524_v7  ;;  %v2531_v38 = vmax.f32 %v2318_v40, 0.0  ;;  %v2533_v14 = vmax.f32 %v2431_v12, 0.0  ;;  %v2322_v55 = vadd.f32 %v2321_v35, %v4305_v25 }
 0x411   : > { %v2764_v61 = vmax.f32 %v2763_v16, %v2526_v27  ;;  %v2532_v51 = vmax.f32 %v2320_v29, 0.0  ;;  %v2435_v62 = vadd.f32 %v2434_v39, %v4308_v32  ;;  %v2534_v45 = vmax.f32 %v2433_v21, 0.0 }
 0x412   : > { %v2702_v41 = vmax.f32 %v2701_v23, %v2531_v38  ;;  %v2324_v48 = vadd.f32 %v2323_v10, %v4314_v31  ;;  %v2437_v53 = vadd.f32 %v2436_v5, %v4331_v43  ;;  %v2744_v3 = vmax.f32 %v2743_v6, %v2533_v14  ;;  %v2446_v23 = vpop.f32.mrb[99].mxu0 }
 0x413   : > { %v2723_v17 = vmax.f32 %v2722_v60, %v2532_v51  ;;  %v2539_v18 = vmax.f32 %v2322_v55, 0.0  ;;  %v2541_v58 = vmax.f32 %v2435_v62, 0.0  ;;  %v2765_v0 = vmax.f32 %v2764_v61, %v2534_v45  ;;  %v2337_v61 = vpop.f32.mrb[68].mxu1  ;;  %v2450_v39 = vpop.f32.mrb[100].mxu0 }
 0x414   : > { %v2540_v19 = vmax.f32 %v2324_v48, 0.0  ;;  %v2542_v22 = vmax.f32 %v2437_v53, 0.0  ;;  %v2328_v47 = vadd.f32 %v2327_v13, %v4305_v25  ;;  %v2441_v46 = vadd.f32 %v2440_v52, %v4308_v32  ;;  %v2339_v10 = vpop.f32.mrb[69].mxu1  ;;  %v2452_v55 = vpop.f32.mrb[101].mxu0 }
 0x415   : > { %v2703_v15 = vmax.f32 %v2702_v41, %v2539_v18  ;;  %v2745_v59 = vmax.f32 %v2744_v3, %v2541_v58  ;;  %v2330_v37 = vadd.f32 %v2329_v57, %v4314_v31  ;;  %v2443_v4 = vadd.f32 %v2442_v49, %v4331_v43  ;;  %v2341_v62 = vpop.f32.mrb[70].mxu1  ;;  %v2454_v48 = vpop.f32.mrb[102].mxu0 }
 0x416   : > { %v2724_v11 = vmax.f32 %v2723_v17, %v2540_v19  ;;  %v2766_v28 = vmax.f32 %v2765_v0, %v2542_v22  ;;  %v2547_v36 = vmax.f32 %v2328_v47, 0.0  ;;  %v2332_v26 = vadd.f32 %v2331_v50, %v4305_v25  ;;  %v2343_v53 = vpop.f32.mrb[71].mxu1  ;;  %v2456_v0 = vpop.f32.mrb[103].mxu0 }
 0x417   : > { %v2549_v33 = vmax.f32 %v2441_v46, 0.0  ;;  %v2548_v16 = vmax.f32 %v2330_v37, 0.0  ;;  %v2445_v1 = vadd.f32 %v2444_v54, %v4308_v32  ;;  %v2334_v30 = vadd.f32 %v2333_v2, %v4314_v31 }
 0x418   : > { %v2704_v63 = vmax.f32 %v2703_v15, %v2547_v36  ;;  %v2550_v44 = vmax.f32 %v2443_v4, 0.0  ;;  %v2555_v7 = vmax.f32 %v2332_v26, 0.0  ;;  %v2447_v27 = vadd.f32 %v2446_v23, %v4331_v43  ;;  %v2347_v50 = vpop.f32.mrb[72].mxu1 }
 0x419   : > { %v2746_v40 = vmax.f32 %v2745_v59, %v2549_v33  ;;  %v2725_v42 = vmax.f32 %v2724_v11, %v2548_v16  ;;  %v2557_v56 = vmax.f32 %v2445_v1, 0.0  ;;  %v2556_v6 = vmax.f32 %v2334_v30, 0.0  ;;  %v2460_v26 = vpop.f32.mrb[104].mxu0  ;;  %v2349_v54 = vpop.f32.mrb[73].mxu1 }
 0x41a   : > { %v2767_v12 = vmax.f32 %v2766_v28, %v2550_v44  ;;  %v2705_v29 = vmax.f32 %v2704_v63, %v2555_v7  ;;  %v2558_v34 = vmax.f32 %v2447_v27, 0.0  ;;  %v2338_v21 = vadd.f32 %v2337_v61, %v4305_v25  ;;  %v2462_v16 = vpop.f32.mrb[105].mxu0  ;;  %v2351_v1 = vpop.f32.mrb[74].mxu1 }
 0x41b   : > { %v2747_v35 = vmax.f32 %v2746_v40, %v2557_v56  ;;  %v2726_v60 = vmax.f32 %v2725_v42, %v2556_v6  ;;  %v2451_v14 = vadd.f32 %v2450_v39, %v4308_v32  ;;  %v2340_v51 = vadd.f32 %v2339_v10, %v4314_v31  ;;  %v2464_v44 = vpop.f32.mrb[106].mxu0  ;;  %v2353_v7 = vpop.f32.mrb[75].mxu1 }
 0x41c   : > { %v2768_v38 = vmax.f32 %v2767_v12, %v2558_v34  ;;  %v2563_v5 = vmax.f32 %v2338_v21, 0.0  ;;  %v2453_v41 = vadd.f32 %v2452_v55, %v4331_v43  ;;  %v2342_v45 = vadd.f32 %v2341_v62, %v4305_v25  ;;  %v2466_v6 = vpop.f32.mrb[107].mxu0 }
 0x41d   : > { %v2565_v3 = vmax.f32 %v2451_v14, 0.0  ;;  %v2564_v17 = vmax.f32 %v2340_v51, 0.0  ;;  %v2455_v18 = vadd.f32 %v2454_v48, %v4308_v32  ;;  %v2344_v58 = vadd.f32 %v2343_v53, %v4314_v31 }
 0x41e   : > { %v2706_v19 = vmax.f32 %v2705_v29, %v2563_v5  ;;  %v2566_v22 = vmax.f32 %v2453_v41, 0.0  ;;  %v2571_v15 = vmax.f32 %v2342_v45, 0.0  ;;  %v2457_v59 = vadd.f32 %v2456_v0, %v4331_v43 }
 0x41f   : > { %v2748_v13 = vmax.f32 %v2747_v35, %v2565_v3  ;;  %v2727_v11 = vmax.f32 %v2726_v60, %v2564_v17  ;;  %v2573_v28 = vmax.f32 %v2455_v18, 0.0  ;;  %v2572_v47 = vmax.f32 %v2344_v58, 0.0 }
 0x420   : > { %v2769_v52 = vmax.f32 %v2768_v38, %v2566_v22  ;;  %v2707_v57 = vmax.f32 %v2706_v19, %v2571_v15  ;;  %v2574_v46 = vmax.f32 %v2457_v59, 0.0  ;;  %v2348_v4 = vadd.f32 %v2347_v50, %v4305_v25  ;;  %v2357_v62 = vpop.f32.mrb[76].mxu1 }
 0x421   : > { %v2749_v37 = vmax.f32 %v2748_v13, %v2573_v28  ;;  %v2728_v49 = vmax.f32 %v2727_v11, %v2572_v47  ;;  %v2461_v2 = vadd.f32 %v2460_v26, %v4308_v32  ;;  %v2350_v33 = vadd.f32 %v2349_v54, %v4314_v31  ;;  %v2359_v45 = vpop.f32.mrb[77].mxu1 }
 0x422   : > { %v2770_v36 = vmax.f32 %v2769_v52, %v2574_v46  ;;  %v2579_v30 = vmax.f32 %v2348_v4, 0.0  ;;  %v2463_v23 = vadd.f32 %v2462_v16, %v4331_v43  ;;  %v2352_v63 = vadd.f32 %v2351_v1, %v4305_v25  ;;  %v2361_v53 = vpop.f32.mrb[78].mxu1 }
 0x423   : > { %v2581_v27 = vmax.f32 %v2461_v2, 0.0  ;;  %v2580_v40 = vmax.f32 %v2350_v33, 0.0  ;;  %v2465_v42 = vadd.f32 %v2464_v44, %v4308_v32  ;;  %v2354_v56 = vadd.f32 %v2353_v7, %v4314_v31  ;;  %v2363_v18 = vpop.f32.mrb[79].mxu1 }
 0x424   : > { %v2708_v12 = vmax.f32 %v2707_v57, %v2579_v30  ;;  %v2582_v29 = vmax.f32 %v2463_v23, 0.0  ;;  %v2587_v34 = vmax.f32 %v2352_v63, 0.0  ;;  %v2467_v35 = vadd.f32 %v2466_v6, %v4331_v43 }
 0x425   : > { %v2750_v60 = vmax.f32 %v2749_v37, %v2581_v27  ;;  %v2729_v61 = vmax.f32 %v2728_v49, %v2580_v40  ;;  %v2589_v38 = vmax.f32 %v2465_v42, 0.0  ;;  %v2588_v21 = vmax.f32 %v2354_v56, 0.0 }
 0x426   : > { %v2771_v39 = vmax.f32 %v2770_v36, %v2582_v29  ;;  %v2709_v10 = vmax.f32 %v2708_v12, %v2587_v34  ;;  %v2590_v14 = vmax.f32 %v2467_v35, 0.0  ;;  %v2358_v41 = vadd.f32 %v2357_v62, %v4305_v25 }
 0x427   : > { %v2751_v51 = vmax.f32 %v2750_v60, %v2589_v38  ;;  %v2730_v55 = vmax.f32 %v2729_v61, %v2588_v21  ;;  %v2360_v48 = vadd.f32 %v2359_v45, %v4314_v31  ;;  %v2362_v17 = vadd.f32 %v2361_v53, %v4305_v25 }
 0x428   : > { %v2772_v5 = vmax.f32 %v2771_v39, %v2590_v14  ;;  %v2595_v3 = vmax.f32 %v2358_v41, 0.0  ;;  %v2364_v0 = vadd.f32 %v2363_v18, %v4314_v31  ;;  %v2470_v28 = vpop.f32.mrb[80].mxu1  ;;  %v2829_v41 = vrot.slane %v2821_v8, %v4334_v9 }
 0x429   : > { %v2596_v58 = vmax.f32 %v2360_v48, 0.0  ;;  %v2603_v22 = vmax.f32 %v2362_v17, 0.0  ;;  %v2471_v52 = vadd.f32 %v2470_v28, %v4308_v32  ;;  %v2472_v57 = vpop.f32.mrb[81].mxu1 }
 0x42a   : > { %v2710_v19 = vmax.f32 %v2709_v10, %v2595_v3  ;;  %v2604_v59 = vmax.f32 %v2364_v0, 0.0  ;;  %v2473_v37 = vadd.f32 %v2472_v57, %v4331_v43  ;;  %v2474_v49 = vpop.f32.mrb[82].mxu1 }
 0x42b   : > { %v2731_v15 = vmax.f32 %v2730_v55, %v2596_v58  ;;  %v2597_v50 = vmax.f32 %v2471_v52, 0.0  ;;  %v2475_v36 = vadd.f32 %v2474_v49, %v4308_v32  ;;  %v2476_v31 = vpop.f32.mrb[83].mxu1 }
 0x42c   : > { %v2711_v13 = vmax.f32 %v2710_v19, %v2603_v22  ;;  %v2598_v26 = vmax.f32 %v2473_v37, 0.0  ;;  %v2477_v54 = vadd.f32 %v2476_v31, %v4331_v43 }
 0x42d   : > { %v2732_v11 = vmax.f32 %v2731_v15, %v2604_v59  ;;  %v2752_v33 = vmax.f32 %v2751_v51, %v2597_v50  ;;  %v2605_v16 = vmax.f32 %v2475_v36, 0.0 }
 0x42e   : > { %v2712_v47 = vrot.slane %v2711_v13, 4  ;;  %v2773_v30 = vmax.f32 %v2772_v5, %v2598_v26  ;;  %v2606_v23 = vmax.f32 %v2477_v54, 0.0 }
 0x42f   : > { %v2733_v46 = vrot.slane %v2732_v11, 4  ;;  %v2753_v44 = vmax.f32 %v2752_v33, %v2605_v16 }
 0x430   : > { %v2713_v25 = vmax.f32 %v2711_v13, %v2712_v47  ;;  %v2774_v27 = vmax.f32 %v2773_v30, %v2606_v23 }
 0x431   : > { %v2734_v4 = vmax.f32 %v2732_v11, %v2733_v46  ;;  %v2754_v42 = vrot.slane %v2753_v44, 4 }
 0x432   : > { %v2714_v2 = vrot.slane %v2713_v25, 2  ;;  %v2775_v6 = vrot.slane %v2774_v27, 4 }
 0x433   : > { %v2735_v1 = vrot.slane %v2734_v4, 2  ;;  %v2755_v12 = vmax.f32 %v2753_v44, %v2754_v42 }
 0x434   : > { %v2715_v63 = vmax.f32 %v2713_v25, %v2714_v2  ;;  %v2776_v34 = vmax.f32 %v2774_v27, %v2775_v6 }
 0x435   : > { %v2736_v7 = vmax.f32 %v2734_v4, %v2735_v1  ;;  %v2756_v43 = vrot.slane %v2755_v12, 2 }
 0x436   : > { %v2716_v40 = vrot.slane %v2715_v63, 1  ;;  %v2777_v60 = vrot.slane %v2776_v34, 2 }
 0x437   : > { %v2737_v56 = vrot.slane %v2736_v7, 1  ;;  %v2757_v61 = vmax.f32 %v2755_v12, %v2756_v43 }
 0x438   : > { %v2717_v32 = vmax.f32 %v2715_v63, %v2716_v40  ;;  %v2778_v38 = vmax.f32 %v2776_v34, %v2777_v60 }
 0x439   : > { %v2738_v29 = vmax.f32 %v2736_v7, %v2737_v56  ;;  %v2758_v21 = vrot.slane %v2757_v61, 1 }
 0x43a   : > { %v2779_v39 = vrot.slane %v2778_v38, 1 }
 0x43b   : > { %v2791_v35 = vcombine.low %v2717_v32, %v2738_v29  ;;  %v2759_v10 = vmax.f32 %v2757_v61, %v2758_v21 }
 0x43c   : > { %v2780_v14 = vmax.f32 %v2778_v38, %v2779_v39 }
 0x43d   : > { %v2813_v55 = vrot.slane %v2791_v35, %v4334_v9 }
 0x43e   : > { %v2792_v51 = vcombine.low %v2759_v10, %v2780_v14 }
 0x440   : > { %v2820_v62 = vrot.slane %v2792_v51, %v4334_v9 }
 0x442   : > { %v2822_v5 = vcombine.low %v2813_v55, %v2820_v62 }
 0x444   : > { %v2836_v45 = vrot.slane %v2822_v5, %v4334_v9 }
 0x446   : > { %v2837_v48 = vcombine.low %v2829_v41, %v2836_v45 }
 0x448   : > { %2845 = vst [vmem:[%s427_s30] sm:$0xff] %v2837_v48 }
 0x449 PF: > { %p3359_p10 = scmp.ge.s32.totalorder %s3549_s18, 2  ;;  %s2883_s17 = sand.u32 1, %s3529_s13  }
 0x44a   : > { %p4525_p1 = scmp.ne.s32.totalorder %s4506_s25, 0  ;;  %s2884_s24 = scalar_lea.sflag [#allocation5], %s2883_s17 }
 0x44c   : > { %p3354_p3 = pnand %p3359_p10, %p4525_p1 }
 0x44e   : > { %3524 = dma.done.wait (!%p3354_p3), %s2884_s24, 2048  }
 0x44f   : > { %3526 = vsyncadd (!%p3354_p3), %s2884_s24, 4294965248  ;;  %s25_s18 = sadd.s32 1, %s3549_s18   ;;  %s4526_s16 = sld [smem:[#allocation9_spill]] }
 0x450   : > { %p22_p5 = scmp.ge.s32.totalorder %s25_s18, 4   ;;  %s4527_s17 = sld [smem:[#allocation10_spill]] }
 0x451   : > { %s4528_s13 = smov %s3533_s14  ;;  %s4529_s14 = smov %s3537_s15 }
 0x452   : > { %s4530_s15 = smov %s3667_s26  ;;  %24 = sbr.rel (!%p22_p5) target bundleno = 5 (0x5), region = 119 }
 0x459   :  { %2896 = vsyncpa [#allocation4], 1 }
 0x45a   :  { %2898 = vsyncpa [#allocation4 + $0x1], 1 }
 0x45b   :  { %2899 = vsyncpa [#allocation5], 1 }
 0x45c   :  { %2901 = vsyncpa [#allocation5 + $0x1], 1 }

</bundles_post_ra>
